<compile_context>
chip_gen: v7x
topology: tpu7x:2x2x1
jax: 0.10.0
libtpu: 0.0.40
codegen_flags: <defaults>
</compile_context>

<pallas_src>
import functools

import jax
import jax.numpy as jnp
from jax.experimental import pallas as pl
from jax.experimental.pallas import tpu as pltpu

INPUT_SIZE = 20
HIDDEN_SIZE = 512
OUTPUT_SIZE = 95
OUT_PAD = 128          # lane-dense padded output width (sliced back to OUTPUT_SIZE)
LN_EPS = 1e-5
LEAKY_SLOPE = 0.01


def _round_up(n, m):
    return ((n + m - 1) // m) * m


def _cdiv(a, b):
    return -(-a // b)


def _layernorm(h, gamma, beta):
    # Two-pass variance (matches torch.nn.LayerNorm); d = h - mu is reused for normalization.
    mu = jnp.mean(h, axis=-1, keepdims=True)
    d = h - mu
    var = jnp.mean(d * d, axis=-1, keepdims=True)
    return d * jax.lax.rsqrt(var + LN_EPS) * gamma + beta


def _leaky_relu(h):
    # slope < 1  =>  max(h, slope*h) == LeakyReLU(h); 2 VPU ops instead of cmp+mul+select.
    return jnp.maximum(h, LEAKY_SLOPE * h)


def metabolic_kernel(x_ref,
                     w1_ref, b1_ref, g1_ref, be1_ref,
                     w2_ref, b2_ref, g2_ref, be2_ref,
                     w3_ref, b3_ref,
                     o_ref):
    # Linear(20 -> 512): full f32 (K=20 is negligible MXU work, keeps layer-1 precision)
    h = jnp.dot(x_ref[...], w1_ref[...], preferred_element_type=jnp.float32) + b1_ref[...]
    h = _leaky_relu(_layernorm(h, g1_ref[...], be1_ref[...]))

    # Linear(512 -> 512): bf16 MXU operands, f32 accumulation
    h = jnp.dot(h.astype(jnp.bfloat16), w2_ref[...],
                preferred_element_type=jnp.float32) + b2_ref[...]
    h = _leaky_relu(_layernorm(h, g2_ref[...], be2_ref[...]))

    # Linear(512 -> 128 padded): columns >= 95 have zero weights/bias
    out = jnp.dot(h.astype(jnp.bfloat16), w3_ref[...],
                  preferred_element_type=jnp.float32) + b3_ref[...]
    o_ref[...] = out.astype(o_ref.dtype)


def prepare_params(params):
    """One-time preprocessing: bf16 weights for layers 2/3, lane-dense pad of the output
    projection. Call once at init so this HBM traffic is not paid on every forward call."""
    (w1, b1, g1, be1, w2, b2, g2, be2, w3, b3) = params
    w2b = w2.astype(jnp.bfloat16)
    w3p = jnp.pad(w3, ((0, 0), (0, OUT_PAD - OUTPUT_SIZE))).astype(jnp.bfloat16)
    b3p = jnp.pad(b3, ((0, 0), (0, OUT_PAD - OUTPUT_SIZE)))
    return (w1, b1, g1, be1, w2b, b2, g2, be2, w3p, b3p)


def _select_tiling(B, max_tile):
    """Pick (num_steps, batch_tile, padded_batch).

    Pads only to a multiple of 8 (sublane), then splits into the fewest tiles <= max_tile,
    with >= 2 steps whenever the padded batch >= 16 (keeps both v7x TensorCores busy).
    Waste is bounded by ~8*num_steps rows instead of up to a full tile.
    """
    B8 = _round_up(B, 8)
    if B8 <= 8:
        n = 1
    else:
        n = max(2, _cdiv(B8, max_tile))
    bt = _round_up(_cdiv(B8, n), 8)
    return n, bt, n * bt


@functools.partial(jax.jit, static_argnames=("max_tile",))
def metabolic_nn(x, prepared_params, max_tile=512):
    B = x.shape[0]
    (w1, b1, g1, be1, w2b, b2, g2, be2, w3p, b3p) = prepared_params

    n_steps, bt, Bp = _select_tiling(B, max_tile)
    if Bp != B:
        x = jnp.pad(x, ((0, Bp - B), (0, 0)))

    grid = (n_steps,)
    rep2d = lambda i: (0, 0)  # weights / biases: same full block at every grid step

    in_specs = [
        pl.BlockSpec((bt, INPUT_SIZE), lambda i: (i, 0)),             # x tile
        pl.BlockSpec((INPUT_SIZE, HIDDEN_SIZE), rep2d),               # w1 (f32)
        pl.BlockSpec((1, HIDDEN_SIZE), rep2d),                        # b1
        pl.BlockSpec((1, HIDDEN_SIZE), rep2d),                        # gamma1
        pl.BlockSpec((1, HIDDEN_SIZE), rep2d),                        # beta1
        pl.BlockSpec((HIDDEN_SIZE, HIDDEN_SIZE), rep2d),              # w2 (bf16)
        pl.BlockSpec((1, HIDDEN_SIZE), rep2d),                        # b2
        pl.BlockSpec((1, HIDDEN_SIZE), rep2d),                        # gamma2
        pl.BlockSpec((1, HIDDEN_SIZE), rep2d),                        # beta2
        pl.BlockSpec((HIDDEN_SIZE, OUT_PAD), rep2d),                  # w3 (bf16, padded)
        pl.BlockSpec((1, OUT_PAD), rep2d),                            # b3 (padded)
    ]
    out_spec = pl.BlockSpec((bt, OUT_PAD), lambda i: (i, 0))

    flops = 2 * Bp * (INPUT_SIZE * HIDDEN_SIZE
                      + HIDDEN_SIZE * HIDDEN_SIZE
                      + HIDDEN_SIZE * OUT_PAD)
    bytes_accessed = (
        Bp * INPUT_SIZE * 4 + Bp * OUT_PAD * 4                          # x + out
        + INPUT_SIZE * HIDDEN_SIZE * 4                                  # w1 (f32)
        + HIDDEN_SIZE * HIDDEN_SIZE * 2 + HIDDEN_SIZE * OUT_PAD * 2     # w2, w3 (bf16)
        + (4 * HIDDEN_SIZE + OUT_PAD) * 4)                              # biases / LN params
    cost = pl.CostEstimate(flops=flops, transcendentals=2 * Bp,
                           bytes_accessed=bytes_accessed)

    out = pl.pallas_call(
        metabolic_kernel,
        out_shape=jax.ShapeDtypeStruct((Bp, OUT_PAD), jnp.float32),
        grid_spec=pltpu.PrefetchScalarGridSpec(
            num_scalar_prefetch=0,
            grid=grid,
            in_specs=in_specs,
            out_specs=out_spec,
        ),
        compiler_params=pltpu.CompilerParams(
            dimension_semantics=("parallel",),
            # Actual footprint < 6 MiB (w2 bf16 double-buffered + (bt,512) f32 intermediates);
            # 32 MiB leaves ample headroom while staying well inside v7x's 64 MiB VMEM.
            vmem_limit_bytes=32 << 20,
        ),
        cost_estimate=cost,
    )(x, w1, b1, g1, be1, w2b, b2, g2, be2, w3p, b3p)

    return out[:B, :OUTPUT_SIZE]


def init_params(key):
    ks = jax.random.split(key, 6)
    # Linear weights stored as [in, out]; gains scaled ~1/sqrt(fan_in).
    w1 = jax.random.normal(ks[0], (INPUT_SIZE, HIDDEN_SIZE), jnp.float32) / jnp.sqrt(INPUT_SIZE)
    b1 = jax.random.normal(ks[1], (1, HIDDEN_SIZE), jnp.float32) * 0.01
    g1 = jnp.ones((1, HIDDEN_SIZE), jnp.float32)
    be1 = jnp.zeros((1, HIDDEN_SIZE), jnp.float32)
    w2 = jax.random.normal(ks[2], (HIDDEN_SIZE, HIDDEN_SIZE), jnp.float32) / jnp.sqrt(HIDDEN_SIZE)
    b2 = jax.random.normal(ks[3], (1, HIDDEN_SIZE), jnp.float32) * 0.01
    g2 = jnp.ones((1, HIDDEN_SIZE), jnp.float32)
    be2 = jnp.zeros((1, HIDDEN_SIZE), jnp.float32)
    w3 = jax.random.normal(ks[4], (HIDDEN_SIZE, OUTPUT_SIZE), jnp.float32) / jnp.sqrt(HIDDEN_SIZE)
    b3 = jax.random.normal(ks[5], (1, OUTPUT_SIZE), jnp.float32) * 0.01
    return (w1, b1, g1, be1, w2, b2, g2, be2, w3, b3)


def reference(x, params):
    # Full-f32 reference matching the PyTorch module semantics.
    (w1, b1, g1, be1, w2, b2, g2, be2, w3, b3) = params

    def ln(h, gamma, beta):
        mu = jnp.mean(h, axis=-1, keepdims=True)
        var = jnp.mean((h - mu) * (h - mu), axis=-1, keepdims=True)
        return (h - mu) * jax.lax.rsqrt(var + LN_EPS) * gamma + beta

    def lrelu(h):
        return jnp.where(h >= 0, h, LEAKY_SLOPE * h)

    h = x @ w1 + b1
    h = lrelu(ln(h, g1, be1))
    h = h @ w2 + b2
    h = lrelu(ln(h, g2, be2))
    return h @ w3 + b3


if __name__ == "__main__":
    key = jax.random.PRNGKey(0)
    kx, kp = jax.random.split(key)
    B = 16  # padded batch >= 16 -> 2 grid steps, exercises multi-step path
    x = jax.random.normal(kx, (B, INPUT_SIZE), jnp.float32)
    params = init_params(kp)
    prepared = prepare_params(params)  # one-time: bf16 cast + lane-dense pad

    out = metabolic_nn(x, prepared)
    out = jax.block_until_ready(out)
    assert out.shape == (B, OUTPUT_SIZE), out.shape

    ref = reference(x, params)
    # Tolerance accounts for bf16 MXU operands in layers 2/3 (f32 accumulation); outputs are O(1).
    assert jnp.allclose(out, ref, atol=5e-2, rtol=5e-2), float(jnp.max(jnp.abs(out - ref)))

    print("KERNEL_OK")
</pallas_src>

<mosaic_0001>
module attributes {stable_mosaic.version = 11 : i64} {
  func.func @metabolic_kernel(%arg0: i32, %arg1: memref<8x20xf32, #tpu.memory_space<vmem>>, %arg2: memref<20x512xf32, #tpu.memory_space<vmem>>, %arg3: memref<1x512xf32, #tpu.memory_space<vmem>>, %arg4: memref<1x512xf32, #tpu.memory_space<vmem>>, %arg5: memref<1x512xf32, #tpu.memory_space<vmem>>, %arg6: memref<512x512xbf16, #tpu.memory_space<vmem>>, %arg7: memref<1x512xf32, #tpu.memory_space<vmem>>, %arg8: memref<1x512xf32, #tpu.memory_space<vmem>>, %arg9: memref<1x512xf32, #tpu.memory_space<vmem>>, %arg10: memref<512x128xbf16, #tpu.memory_space<vmem>>, %arg11: memref<1x128xf32, #tpu.memory_space<vmem>>, %arg12: memref<8x128xf32, #tpu.memory_space<vmem>>) attributes {dimension_semantics = [#tpu.dimension_semantics<parallel>], iteration_bounds = array<i64: 2>, scalar_prefetch = 0 : i64, scratch_operands = 0 : i64, tpu.core_type = #tpu.core_type<tc>, window_params = [{transform_indices = @transform_0, window_bounds = array<i64: 8, 20>}, {pipeline_mode = #tpu.pipeline_mode<synchronous>, transform_indices = @transform_1, window_bounds = array<i64: 20, 512>}, {pipeline_mode = #tpu.pipeline_mode<synchronous>, transform_indices = @transform_2, window_bounds = array<i64: 1, 512>}, {pipeline_mode = #tpu.pipeline_mode<synchronous>, transform_indices = @transform_3, window_bounds = array<i64: 1, 512>}, {pipeline_mode = #tpu.pipeline_mode<synchronous>, transform_indices = @transform_4, window_bounds = array<i64: 1, 512>}, {pipeline_mode = #tpu.pipeline_mode<synchronous>, transform_indices = @transform_5, window_bounds = array<i64: 512, 512>}, {pipeline_mode = #tpu.pipeline_mode<synchronous>, transform_indices = @transform_6, window_bounds = array<i64: 1, 512>}, {pipeline_mode = #tpu.pipeline_mode<synchronous>, transform_indices = @transform_7, window_bounds = array<i64: 1, 512>}, {pipeline_mode = #tpu.pipeline_mode<synchronous>, transform_indices = @transform_8, window_bounds = array<i64: 1, 512>}, {pipeline_mode = #tpu.pipeline_mode<synchronous>, transform_indices = @transform_9, window_bounds = array<i64: 512, 128>}, {pipeline_mode = #tpu.pipeline_mode<synchronous>, transform_indices = @transform_10, window_bounds = array<i64: 1, 128>}, {transform_indices = @transform_11, window_bounds = array<i64: 8, 128>}]} {
    %c0 = arith.constant 0 : index
    %c0_0 = arith.constant 0 : index
    %0 = vector.load %arg1[%c0, %c0_0] : memref<8x20xf32, #tpu.memory_space<vmem>>, vector<8x20xf32>
    %c0_1 = arith.constant 0 : index
    %c0_2 = arith.constant 0 : index
    %1 = vector.load %arg2[%c0_1, %c0_2] : memref<20x512xf32, #tpu.memory_space<vmem>>, vector<20x512xf32>
    %cst = arith.constant dense<0.000000e+00> : vector<8x512xf32>
    %2 = tpu.matmul %0, %1, %cst {dimension_numbers = #tpu.dot_dimension_numbers<[1], [0], [0], [1], [0, 0, 1, 1], [], []>} : vector<8x20xf32>, vector<20x512xf32>, vector<8x512xf32> -> vector<8x512xf32>
    %c0_3 = arith.constant 0 : index
    %c0_4 = arith.constant 0 : index
    %3 = vector.load %arg3[%c0_3, %c0_4] : memref<1x512xf32, #tpu.memory_space<vmem>>, vector<1x512xf32>
    %4 = vector.broadcast %3 : vector<1x512xf32> to vector<8x512xf32>
    %5 = arith.addf %2, %4 : vector<8x512xf32>
    %c0_5 = arith.constant 0 : index
    %c0_6 = arith.constant 0 : index
    %6 = vector.load %arg4[%c0_5, %c0_6] : memref<1x512xf32, #tpu.memory_space<vmem>>, vector<1x512xf32>
    %c0_7 = arith.constant 0 : index
    %c0_8 = arith.constant 0 : index
    %7 = vector.load %arg5[%c0_7, %c0_8] : memref<1x512xf32, #tpu.memory_space<vmem>>, vector<1x512xf32>
    %cst_9 = arith.constant dense<0.000000e+00> : vector<8xf32>
    %8 = vector.multi_reduction <add>, %5, %cst_9 [1] : vector<8x512xf32> to vector<8xf32>
    %9 = vector.shape_cast %8 : vector<8xf32> to vector<8x1xf32>
    %cst_10 = arith.constant 5.120000e+02 : f32
    %10 = vector.broadcast %cst_10 : f32 to vector<8x1xf32>
    %11 = arith.divf %9, %10 : vector<8x1xf32>
    %12 = vector.broadcast %11 : vector<8x1xf32> to vector<8x512xf32>
    %13 = arith.subf %5, %12 : vector<8x512xf32>
    %14 = arith.mulf %13, %13 : vector<8x512xf32>
    %cst_11 = arith.constant dense<0.000000e+00> : vector<8xf32>
    %15 = vector.multi_reduction <add>, %14, %cst_11 [1] : vector<8x512xf32> to vector<8xf32>
    %16 = vector.shape_cast %15 : vector<8xf32> to vector<8x1xf32>
    %cst_12 = arith.constant 5.120000e+02 : f32
    %17 = vector.broadcast %cst_12 : f32 to vector<8x1xf32>
    %18 = arith.divf %16, %17 : vector<8x1xf32>
    %cst_13 = arith.constant 9.99999974E-6 : f32
    %19 = vector.broadcast %cst_13 : f32 to vector<8x1xf32>
    %20 = arith.addf %18, %19 : vector<8x1xf32>
    %21 = math.rsqrt %20 : vector<8x1xf32>
    %22 = vector.broadcast %21 : vector<8x1xf32> to vector<8x512xf32>
    %23 = arith.mulf %13, %22 : vector<8x512xf32>
    %24 = vector.broadcast %6 : vector<1x512xf32> to vector<8x512xf32>
    %25 = arith.mulf %23, %24 : vector<8x512xf32>
    %26 = vector.broadcast %7 : vector<1x512xf32> to vector<8x512xf32>
    %27 = arith.addf %25, %26 : vector<8x512xf32>
    %cst_14 = arith.constant 0.00999999977 : f32
    %28 = vector.broadcast %cst_14 : f32 to vector<8x512xf32>
    %29 = arith.mulf %28, %27 : vector<8x512xf32>
    %30 = arith.maximumf %27, %29 : vector<8x512xf32>
    %31 = arith.truncf %30 : vector<8x512xf32> to vector<8x512xbf16>
    %c0_15 = arith.constant 0 : index
    %c0_16 = arith.constant 0 : index
    %32 = vector.load %arg6[%c0_15, %c0_16] : memref<512x512xbf16, #tpu.memory_space<vmem>>, vector<512x512xbf16>
    %cst_17 = arith.constant dense<0.000000e+00> : vector<8x512xf32>
    %33 = tpu.matmul %31, %32, %cst_17 {dimension_numbers = #tpu.dot_dimension_numbers<[1], [0], [0], [1], [0, 0, 1, 1], [], []>} : vector<8x512xbf16>, vector<512x512xbf16>, vector<8x512xf32> -> vector<8x512xf32>
    %c0_18 = arith.constant 0 : index
    %c0_19 = arith.constant 0 : index
    %34 = vector.load %arg7[%c0_18, %c0_19] : memref<1x512xf32, #tpu.memory_space<vmem>>, vector<1x512xf32>
    %35 = vector.broadcast %34 : vector<1x512xf32> to vector<8x512xf32>
    %36 = arith.addf %33, %35 : vector<8x512xf32>
    %c0_20 = arith.constant 0 : index
    %c0_21 = arith.constant 0 : index
    %37 = vector.load %arg8[%c0_20, %c0_21] : memref<1x512xf32, #tpu.memory_space<vmem>>, vector<1x512xf32>
    %c0_22 = arith.constant 0 : index
    %c0_23 = arith.constant 0 : index
    %38 = vector.load %arg9[%c0_22, %c0_23] : memref<1x512xf32, #tpu.memory_space<vmem>>, vector<1x512xf32>
    %cst_24 = arith.constant dense<0.000000e+00> : vector<8xf32>
    %39 = vector.multi_reduction <add>, %36, %cst_24 [1] : vector<8x512xf32> to vector<8xf32>
    %40 = vector.shape_cast %39 : vector<8xf32> to vector<8x1xf32>
    %cst_25 = arith.constant 5.120000e+02 : f32
    %41 = vector.broadcast %cst_25 : f32 to vector<8x1xf32>
    %42 = arith.divf %40, %41 : vector<8x1xf32>
    %43 = vector.broadcast %42 : vector<8x1xf32> to vector<8x512xf32>
    %44 = arith.subf %36, %43 : vector<8x512xf32>
    %45 = arith.mulf %44, %44 : vector<8x512xf32>
    %cst_26 = arith.constant dense<0.000000e+00> : vector<8xf32>
    %46 = vector.multi_reduction <add>, %45, %cst_26 [1] : vector<8x512xf32> to vector<8xf32>
    %47 = vector.shape_cast %46 : vector<8xf32> to vector<8x1xf32>
    %cst_27 = arith.constant 5.120000e+02 : f32
    %48 = vector.broadcast %cst_27 : f32 to vector<8x1xf32>
    %49 = arith.divf %47, %48 : vector<8x1xf32>
    %cst_28 = arith.constant 9.99999974E-6 : f32
    %50 = vector.broadcast %cst_28 : f32 to vector<8x1xf32>
    %51 = arith.addf %49, %50 : vector<8x1xf32>
    %52 = math.rsqrt %51 : vector<8x1xf32>
    %53 = vector.broadcast %52 : vector<8x1xf32> to vector<8x512xf32>
    %54 = arith.mulf %44, %53 : vector<8x512xf32>
    %55 = vector.broadcast %37 : vector<1x512xf32> to vector<8x512xf32>
    %56 = arith.mulf %54, %55 : vector<8x512xf32>
    %57 = vector.broadcast %38 : vector<1x512xf32> to vector<8x512xf32>
    %58 = arith.addf %56, %57 : vector<8x512xf32>
    %cst_29 = arith.constant 0.00999999977 : f32
    %59 = vector.broadcast %cst_29 : f32 to vector<8x512xf32>
    %60 = arith.mulf %59, %58 : vector<8x512xf32>
    %61 = arith.maximumf %58, %60 : vector<8x512xf32>
    %62 = arith.truncf %61 : vector<8x512xf32> to vector<8x512xbf16>
    %c0_30 = arith.constant 0 : index
    %c0_31 = arith.constant 0 : index
    %63 = vector.load %arg10[%c0_30, %c0_31] : memref<512x128xbf16, #tpu.memory_space<vmem>>, vector<512x128xbf16>
    %cst_32 = arith.constant dense<0.000000e+00> : vector<8x128xf32>
    %64 = tpu.matmul %62, %63, %cst_32 {dimension_numbers = #tpu.dot_dimension_numbers<[1], [0], [0], [1], [0, 0, 1, 1], [], []>} : vector<8x512xbf16>, vector<512x128xbf16>, vector<8x128xf32> -> vector<8x128xf32>
    %c0_33 = arith.constant 0 : index
    %c0_34 = arith.constant 0 : index
    %65 = vector.load %arg11[%c0_33, %c0_34] : memref<1x128xf32, #tpu.memory_space<vmem>>, vector<1x128xf32>
    %66 = vector.broadcast %65 : vector<1x128xf32> to vector<8x128xf32>
    %67 = arith.addf %64, %66 : vector<8x128xf32>
    %c0_35 = arith.constant 0 : index
    %c0_36 = arith.constant 0 : index
    %68 = vector.load %arg12[%c0_35, %c0_36] : memref<8x128xf32, #tpu.memory_space<vmem>>, vector<8x128xf32>
    tpu.vector_store %arg12[%c0_35, %c0_36], %67 {strides = array<i32>} : memref<8x128xf32, #tpu.memory_space<vmem>>, vector<8x128xf32>,
    return
  }
  func.func @transform_0(%arg0: i32) -> (i32, i32) {
    %c0_i32 = arith.constant 0 : i32
    %c0_i32_0 = arith.constant 0 : i32
    return %arg0, %c0_i32 : i32, i32
  }
  func.func @transform_1(%arg0: i32) -> (i32, i32) {
    %c0_i32 = arith.constant 0 : i32
    %c0_i32_0 = arith.constant 0 : i32
    %c0_i32_1 = arith.constant 0 : i32
    return %c0_i32, %c0_i32_0 : i32, i32
  }
  func.func @transform_2(%arg0: i32) -> (i32, i32) {
    %c0_i32 = arith.constant 0 : i32
    %c0_i32_0 = arith.constant 0 : i32
    %c0_i32_1 = arith.constant 0 : i32
    return %c0_i32, %c0_i32_0 : i32, i32
  }
  func.func @transform_3(%arg0: i32) -> (i32, i32) {
    %c0_i32 = arith.constant 0 : i32
    %c0_i32_0 = arith.constant 0 : i32
    %c0_i32_1 = arith.constant 0 : i32
    return %c0_i32, %c0_i32_0 : i32, i32
  }
  func.func @transform_4(%arg0: i32) -> (i32, i32) {
    %c0_i32 = arith.constant 0 : i32
    %c0_i32_0 = arith.constant 0 : i32
    %c0_i32_1 = arith.constant 0 : i32
    return %c0_i32, %c0_i32_0 : i32, i32
  }
  func.func @transform_5(%arg0: i32) -> (i32, i32) {
    %c0_i32 = arith.constant 0 : i32
    %c0_i32_0 = arith.constant 0 : i32
    %c0_i32_1 = arith.constant 0 : i32
    return %c0_i32, %c0_i32_0 : i32, i32
  }
  func.func @transform_6(%arg0: i32) -> (i32, i32) {
    %c0_i32 = arith.constant 0 : i32
    %c0_i32_0 = arith.constant 0 : i32
    %c0_i32_1 = arith.constant 0 : i32
    return %c0_i32, %c0_i32_0 : i32, i32
  }
  func.func @transform_7(%arg0: i32) -> (i32, i32) {
    %c0_i32 = arith.constant 0 : i32
    %c0_i32_0 = arith.constant 0 : i32
    %c0_i32_1 = arith.constant 0 : i32
    return %c0_i32, %c0_i32_0 : i32, i32
  }
  func.func @transform_8(%arg0: i32) -> (i32, i32) {
    %c0_i32 = arith.constant 0 : i32
    %c0_i32_0 = arith.constant 0 : i32
    %c0_i32_1 = arith.constant 0 : i32
    return %c0_i32, %c0_i32_0 : i32, i32
  }
  func.func @transform_9(%arg0: i32) -> (i32, i32) {
    %c0_i32 = arith.constant 0 : i32
    %c0_i32_0 = arith.constant 0 : i32
    %c0_i32_1 = arith.constant 0 : i32
    return %c0_i32, %c0_i32_0 : i32, i32
  }
  func.func @transform_10(%arg0: i32) -> (i32, i32) {
    %c0_i32 = arith.constant 0 : i32
    %c0_i32_0 = arith.constant 0 : i32
    %c0_i32_1 = arith.constant 0 : i32
    return %c0_i32, %c0_i32_0 : i32, i32
  }
  func.func @transform_11(%arg0: i32) -> (i32, i32) {
    %c0_i32 = arith.constant 0 : i32
    %c0_i32_0 = arith.constant 0 : i32
    return %arg0, %c0_i32 : i32, i32
  }
}

</mosaic_0001>

<bundles_post_ra>
// kernel: metabolic_nn.1
= control target key start
LH: loop header
LB: loop body
LE: loop exit
PB: predicated region body
PF: predicated region fallthrough
CT: control target
= control target key end

     0   :  { %s3424_s0 = inlined_call_operand.hbm [shape: f32[16,20], index: 0, kind: input, shape index: {}]   ;;  %s3425_s1 = inlined_call_operand.hbm [shape: f32[20,512], index: 1, kind: input, shape index: {}]   ;;  %s3426_s2 = inlined_call_operand.vmem [shape: f32[1,512], index: 2, kind: input, shape index: {}]   ;;  %s3427_s3 = inlined_call_operand.vmem [shape: f32[1,512], index: 3, kind: input, shape index: {}]   ;;  %s3428_s4 = inlined_call_operand.vmem [shape: f32[1,512], index: 4, kind: input, shape index: {}]   ;;  %s3429_s5 = inlined_call_operand.hbm [shape: bf16[512,512], index: 5, kind: input, shape index: {}]   ;;  %s3430_s6 = inlined_call_operand.vmem [shape: f32[1,512], index: 6, kind: input, shape index: {}]   ;;  %s3431_s7 = inlined_call_operand.vmem [shape: f32[1,512], index: 7, kind: input, shape index: {}]   ;;  %s3432_s8 = inlined_call_operand.vmem [shape: f32[1,512], index: 8, kind: input, shape index: {}]   ;;  %s3433_s9 = inlined_call_operand.hbm [shape: bf16[512,128], index: 9, kind: input, shape index: {}]   ;;  %s3434_s10 = inlined_call_operand.vmem [shape: f32[1,128], index: 10, kind: input, shape index: {}]   ;;  %s3435_s11 = inlined_call_operand.hbm [shape: f32[16,128], index: 11, kind: output, shape index: {}]  }
   0x1   :  { %3442 = sst [smem:[#allocation17_spill]] %s3425_s1 }
   0x2   :  { %3443 = sst [smem:[#allocation18_spill]] %s3434_s10 }
   0x3   :  { %3444 = sst [smem:[#allocation19_spill]] %s3435_s11 }
   0x4   :  { %16 = vsyncpa [#allocation3], 0 }
   0x5   :  { %18 = vsyncpa [#allocation3 + $0x1], 0 }
   0x6   :  { %19 = vsyncpa [#allocation6], 0 }
   0x7   :  { %20 = vsyncpa [#allocation9], 0 }
   0x8   :  { %21 = vsyncpa [#allocation4], 0 }
   0x9   :  { %23 = vsyncpa [#allocation4 + $0x1], 0  ;;  %s3056_s17 = smov 0   ;;  %s3058_s18 = smov 0  }
   0xa   :  { %s3060_s19 = smov 0   ;;  %s3062_s20 = smov 0  }
   0xb LB: > { %3445 = sst [smem:[#allocation15_spill]] %s2970_s17  ;;  %s3077_s21 = sadd.s32 4294967295, %s2982_s20   ;;  %s2982_s20 = sphi %s3062_s20, %s3472_s20   ;;  %s2978_s19 = sphi %s3060_s19, %s3471_s19   ;;  %s2974_s18 = sphi %s3058_s18, %s3470_s18   ;;  %s2970_s17 = sphi %s3056_s17, %s3469_s17  }
   0xc   : > { %s2233_s22 = sadd.s32 4294967294, %s2982_s20   ;;  %p49_p0 = scmp.ne.s32.totalorder %s2974_s18, %s2970_s17 }
   0xd   : > { %p3436_p1 = scmp.eq.s32.totalorder %s3077_s21, 0  ;;  %p289_p3 = scmp.eq.s32.totalorder %s2233_s22, 1 }
   0xe   : > { %p2234_p5 = scmp.ge.s32.totalorder %s2982_s20, 1  ;;  %p296_p7 = scmp.lt.s32.totalorder %s2982_s20, 3 }
   0xf   : > { %p3086_p4 = por %p3436_p1, %p49_p0  ;;  %p3091_p6 = por %p289_p3, %p49_p0 }
  0x10   : > { %p3096_p8 = pnand %p2234_p5, %p296_p7  ;;  %s2984_s26 = smov [#allocation5]  }
  0x11   : > { %s3446_s23 = scalar_select %p3086_p4, 1, 0 }
  0x12   : > { %s3447_s24 = scalar_select %p3091_p6, 1, 0 }
  0x13   : > { %s3449_s25 = scalar_select %p3096_p8, 1, 0 }
  0x14   : > { %3448 = sst [smem:[#allocation16_spill]] %s3447_s24  ;;  %s308_s27 = sshll.u32 %s2984_s26, 4  ;;  %s3100_s27 = int_to_ptr.vmem [resolvable:$true] %s308_s27 }
  0x15   : > { %p2498_p9 = pneg %p3096_p8  ;;  %s2985_s29 = smov [#allocation7]  }
  0x16   : > { %s330_s30 = sshll.u32 %s2985_s29, 4  ;;  %s3451_s1 = sld [smem:[#allocation17_spill]]  ;;  %s3111_s30 = int_to_ptr.vmem [resolvable:$true] %s330_s30 }
  0x17   : > { %p3107_p11 = pnand %p2498_p9, %p3436_p1 }
  0x19   : > { %p3121_p13 = pneg %p3107_p11 }
  0x1c   : > { %s2794_s14 = scalar_lea.hbm %s3451_s1, 1536 }
  0x1d   : > { %p2795_p12 = scmp.ne.s32.totalorder %s3451_s1, %s2794_s14  ;;  %p2801_p5 = scmp.lt.u32.totalorder %s2794_s14, %s3451_s1 }
  0x1f   : > { %p2797_p0 = pnand %p3121_p13, %p2795_p12 }
  0x21   : > { %p2798_p3 = pneg %p2797_p0 }
  0x23   : > { %p2803_p7 = pnand %p2801_p5, %p2798_p3 }
  0x25   : > { %2806 = shalt.err (!%p2803_p7)
}
  0x26   : > { %s2807_s12 = scalar_lea.vmem %s3100_s27, 1536  ;;  %p2815_p2 = scmp.lt.s32.totalorder %s3100_s27, %s3100_s27 }
  0x27   : > { %p2808_p9 = scmp.ne.s32.totalorder %s3100_s27, %s2807_s12  ;;  %p2816_p6 = scmp.lt.s32.totalorder %s2807_s12, %s2807_s12 }
  0x29   : > { %p2810_p10 = pnand %p2808_p9, %p3121_p13  ;;  %p2817_p12 = por %p2816_p6, %p2815_p2 }
  0x2b   : > { %p2811_p1 = pneg %p2810_p10 }
  0x2d   : > { %p2818_p0 = pnand %p2817_p12, %p2811_p1 }
  0x2f   : > { %2821 = shalt.err (!%p2818_p0)
}
  0x30   : > { %s2986_s13 = smov 512   ;;  %s2987_s14 = smov 32  }
  0x31   : > { %2501 = dma.hbm_to_vmem [thread:$0]  (!%p3107_p11), %s3451_s1, 1536, %s3100_s27, [#allocation6], %s2986_s13, %s2986_s13, %s2987_s14  }
  0x32   : > { %s2822_s24 = scalar_lea.hbm %s3429_s5, 16384 }
  0x33   : > { %p2823_p2 = scmp.ne.s32.totalorder %s3429_s5, %s2822_s24  ;;  %p2829_p10 = scmp.lt.u32.totalorder %s2822_s24, %s3429_s5 }
  0x35   : > { %p2825_p1 = pnand %p2823_p2, %p3121_p13 }
  0x37   : > { %p2826_p6 = pneg %p2825_p1 }
  0x39   : > { %p2831_p3 = pnand %p2829_p10, %p2826_p6 }
  0x3b   : > { %2834 = shalt.err (!%p2831_p3)
}
  0x3c   : > { %s2835_s27 = scalar_lea.vmem %s3111_s30, 16384  ;;  %p2843_p12 = scmp.lt.s32.totalorder %s3111_s30, %s3111_s30 }
  0x3d   : > { %p2836_p5 = scmp.ne.s32.totalorder %s3111_s30, %s2835_s27  ;;  %p2844_p0 = scmp.lt.s32.totalorder %s2835_s27, %s2835_s27 }
  0x3f   : > { %p2838_p7 = pnand %p2836_p5, %p3121_p13  ;;  %p2845_p2 = por %p2844_p0, %p2843_p12 }
  0x41   : > { %p2839_p9 = pneg %p2838_p7 }
  0x43   : > { %p2846_p1 = pnand %p2845_p2, %p2839_p9 }
  0x45   : > { %2849 = shalt.err (!%p2846_p1)
}
  0x46   : > { %s2988_s11 = smov 256   ;;  %s2989_s10 = smov 16  }
  0x47   : > { %2504 = dma.hbm_to_vmem [thread:$0]  (!%p3107_p11), %s3429_s5, 16384, %s3111_s30, [#allocation6], %s2988_s11, %s2988_s11, %s2989_s10  }
  0x48   : > { %s2990_s13 = smov [#allocation8]   ;;  %s2850_s26 = scalar_lea.hbm %s3433_s9, 4096 }
  0x49   : > { %s352_s14 = sshll.u32 %s2990_s13, 4  ;;  %p2851_p6 = scmp.ne.s32.totalorder %s3433_s9, %s2850_s26  ;;  %s353_s14 = int_to_ptr.vmem [resolvable:$true] %s352_s14 }
  0x4a   : > { %p2857_p5 = scmp.lt.u32.totalorder %s2850_s26, %s3433_s9 }
  0x4b   : > { %p2853_p10 = pnand %p2851_p6, %p3121_p13 }
  0x4d   : > { %p2854_p3 = pneg %p2853_p10 }
  0x4f   : > { %p2859_p7 = pnand %p2857_p5, %p2854_p3 }
  0x51   : > { %2862 = shalt.err (!%p2859_p7)
}
  0x52   : > { %s2863_s30 = scalar_lea.vmem %s353_s14, 4096  ;;  %p2871_p2 = scmp.lt.s32.totalorder %s353_s14, %s353_s14 }
  0x53   : > { %p2864_p9 = scmp.ne.s32.totalorder %s353_s14, %s2863_s30  ;;  %p2872_p1 = scmp.lt.s32.totalorder %s2863_s30, %s2863_s30 }
  0x55   : > { %p2866_p12 = pnand %p2864_p9, %p3121_p13  ;;  %p2873_p4 = por %p2872_p1, %p2871_p2 }
  0x57   : > { %p2867_p0 = pneg %p2866_p12 }
  0x59   : > { %p2874_p8 = pnand %p2873_p4, %p2867_p0 }
  0x5b   : > { %2877 = shalt.err (!%p2874_p8)
}
  0x5c   : > { %s2991_s11 = smov 64   ;;  %s2992_s1 = smov 4  }
  0x5d   : > { %2507 = dma.hbm_to_vmem [thread:$0]  (!%p3107_p11), %s3433_s9, 4096, %s353_s14, [#allocation9], %s2991_s11, %s2991_s11, %s2992_s1  }
  0x5e   : > { %s3184_s17 = sadd.s32 1, %s2982_s20   ;;  %s36_s13 = sadd.s32 1, %s2978_s19 }
  0x5f   : > { %s33_s24 = ssub.s32 %s2982_s20, %s3184_s17  ;;  %p43_p8 = scmp.ne.s32.totalorder %s2978_s19, %s2974_s18 }
  0x60   : > { %p34_p4 = scmp.eq.s32.totalorder %s33_s24, 0  ;;  %p44_p13 = scmp.eq.s32.totalorder %s2982_s20, 0 }
  0x61   : > { %p2519_p6 = scmp.lt.s32.totalorder %s2982_s20, 2  ;;  %p3453_p3 = scmp.eq.s32.totalorder %s3077_s21, 1 }
  0x62   : > { %s3194_s15 = scalar_select %p34_p4, %s2978_s19, %s36_s13  }
  0x63   : > { %p45_p10 = por %p44_p13, %p43_p8  ;;  %p3198_p5 = por %p3453_p3, %p43_p8 }
  0x64   : > { %s369_s28 = sand.u32 1, %s2978_s19   ;;  %s2240_s26 = sshll.u32 %s2982_s20, 7 }
  0x65   : > { %s2239_s14 = sshll.u32 %s369_s28, 3  ;;  %s3207_s27 = scalar_lea.hbm %s3424_s0, %s2240_s26 }
  0x66   : > { %s373_s30 = scalar_lea.vmem [#allocation2], %s2239_s14  ;;  %p3209_p11 = pnand %p2519_p6, %p45_p10 }
  0x67   : > { %s380_s11 = sshll.u32 %s373_s30, 4  ;;  %s370_s22 = scalar_lea.sflag [#allocation3], %s369_s28  ;;  %s3213_s11 = int_to_ptr.vmem [resolvable:$true] %s380_s11 }
  0x68   : > { %s2878_s10 = scalar_lea.hbm %s3207_s27, 128  ;;  %p2880_p9 = pneg %p3209_p11 }
  0x69   : > { %p2879_p7 = scmp.ne.s32.totalorder %s3207_s27, %s2878_s10  ;;  %s2883_s26 = scalar_lea.hbm %s3424_s0, 256 }
  0x6a   : > { %p2884_p2 = scmp.lt.u32.totalorder %s3207_s27, %s3424_s0  ;;  %p2885_p1 = scmp.lt.u32.totalorder %s2883_s26, %s2878_s10 }
  0x6b   : > { %p2881_p12 = pnand %p2880_p9, %p2879_p7  ;;  %p2887_p8 = scmp.lt.u32.totalorder %s2878_s10, %s3207_s27 }
  0x6c   : > { %p2886_p4 = por %p2885_p1, %p2884_p2 }
  0x6d   : > { %p2882_p0 = pneg %p2881_p12 }
  0x6e   : > { %p2888_p13 = por %p2887_p8, %p2886_p4 }
  0x70   : > { %p2889_p6 = pnand %p2888_p13, %p2882_p0 }
  0x72   : > { %2892 = shalt.err (!%p2889_p6)
}
  0x73   : > { %s2893_s28 = scalar_lea.vmem %s3213_s11, 128  ;;  %s2993_s12 = smov [#allocation2]  }
  0x74   : > { %p2894_p10 = scmp.ne.s32.totalorder %s3213_s11, %s2893_s28  ;;  %s2898_s30 = sshll.u32 %s2993_s12, 4  ;;  %s2899_s30 = int_to_ptr.vmem [resolvable:$false] %s2898_s30 }
  0x75   : > { %s2900_s24 = scalar_lea.vmem %s2899_s30, 256  ;;  %p2901_p12 = scmp.lt.s32.totalorder %s3213_s11, %s2899_s30 }
  0x76   : > { %p2896_p3 = pnand %p2894_p10, %p2880_p9  ;;  %p2902_p2 = scmp.lt.s32.totalorder %s2900_s24, %s2893_s28 }
  0x78   : > { %p2897_p7 = pneg %p2896_p3  ;;  %p2903_p1 = por %p2902_p2, %p2901_p12 }
  0x7a   : > { %p2904_p4 = pnand %p2903_p1, %p2897_p7 }
  0x7c   : > { %2907 = shalt.err (!%p2904_p4)
}
  0x7d   : > { %2511 = dma.hbm_to_vmem [thread:$0]  (!%p3209_p11), %s3207_s27, 128, %s3213_s11, %s370_s22  }
  0x7e   : > { %p3456_p0 = scmp.ne.s32.totalorder %s3449_s25, 0 }
  0x7f   : > { %s3243_s10 = sand.u32 (!%p3456_p0), 1, %s2974_s18   ;;  %p3457_p9 = scmp.ne.s32.totalorder (!%p3456_p0), %s3446_s23, 0 }
  0x80   : > { %389 = sbr.rel (%p3456_p0) target bundleno = 1540 (0x604), region = 64  ;;  %s2242_s13 = sshll.u32 (!%p3456_p0), %s3243_s10, 3 }
  0x81   : > { %s392_s26 = scalar_lea.sflag (!%p3456_p0), [#allocation3], %s3243_s10  ;;  %s395_s14 = scalar_lea.vmem (!%p3456_p0), [#allocation2], %s2242_s13 }
  0x87   : > { %2953 = dma.done.wait (%p3457_p9), %s392_s26, 128  }
  0x88   : > { %2955 = vsyncadd (%p3457_p9), %s392_s26, 4294967168  ;;  %p3458_p11 = scmp.eq.s32.totalorder %s3077_s21, 0 }
  0x8a   : > { %2957 = dma.done.wait (%p3458_p11), [#allocation6], 17920   ;;  %p3459_p8 = pmov %p3458_p11 }
  0x8c   : > { %2959 = vsyncadd (%p3459_p8), [#allocation6], 4294949376  ;;  %p3460_p13 = pmov %p3459_p8 }
  0x8d   : > { %p3461_p6 = pmov %p3459_p8 }
  0x8e   : > { %2961 = dma.done.wait (%p3460_p13), [#allocation9], 4096  }
  0x8f   : > { %2963 = vsyncadd (%p3461_p6), [#allocation9], 4294963200  ;;  %v2994_v0 = vmov 0.0   ;;  %v449_v1 = vld [vmem:[#allocation5 + $0x8] sm:$0xff]  ;;  %v448_v3 = vld [vmem:[#allocation5] sm:$0xff]  ;;  %vm486_vm0 = vcmask 1043456   ;;  %v462_v18 = vlaneseq }
  0x90   : > { %563 = vmatprep.mubr.f32.mxu0 %v2994_v0  ;;  %634 = vmatprep.mubr.f32.mxu1 %v2994_v0  ;;  %v453_v2 = vld [vmem:[#allocation5 + $0x28] sm:$0xff]  ;;  %v452_v5 = vld [vmem:[#allocation5 + $0x20] sm:$0xff]  ;;  %v451_v6 = vld [vmem:[#allocation5 + $0x18] sm:$0xff]  ;;  %vm482_vm1 = vcmask 162816   ;;  %s3462_s25 = sld [smem:[#allocation18_spill]]  ;;  %s2415_s27 = sshll.u32 %s3077_s21, 7 }
  0x91   : > { %v2462_v4 = vpack.c.bf16 %v453_v2, %v449_v1  ;;  %v455_v7 = vld [vmem:[#allocation5 + $0x38] sm:$0xff]  ;;  %v2464_v8 = vpack.c.bf16 %v452_v5, %v448_v3  ;;  %v450_v10 = vld [vmem:[#allocation5 + $0x10] sm:$0xff]  ;;  %v457_v12 = vld [vmem:[#allocation5 + $0x48] sm:$0xf]  ;;  %v463_v19 = vshrl.u32 %v462_v18, 7  ;;  %s445_s11 = scalar_lea.vmem [#allocation10], %s2242_s13 }
  0x92   : > { %v2466_v9 = vpack.c.bf16 %v455_v7, %v451_v6  ;;  %v454_v11 = vld [vmem:[#allocation5 + $0x30] sm:$0xff]  ;;  %v456_v14 = vld [vmem:[#allocation5 + $0x40] sm:$0xf]  ;;  %v459_v15 = vld [vmem:[#allocation5 + $0x58] sm:$0xf]  ;;  %s2134_s1 = sshll.u32 %s445_s11, 4  ;;  %s3382_s1 = int_to_ptr.vmem [resolvable:$true] %s2134_s1 }
  0x93   : > { %2463 = vmatprep.subr.bf16.mxu0 %v2462_v4  ;;  %v2468_v13 = vpack.c.bf16 %v454_v11, %v450_v10  ;;  %v447_v16 = vld [vmem:[%s395_s14] sm:$0xff]  ;;  %v3261_v20 = vsub.s32 0, %v463_v19  ;;  %v3266_v22 = vsub.s32 1, %v463_v19  ;;  %v3268_v23 = vsub.s32 2, %v463_v19  ;;  %s3463_s28 = sld [smem:[#allocation19_spill]]  ;;  %s2121_s30 = scalar_lea.sflag [#allocation4], %s3243_s10 }
  0x94   : > { %2465 = vmatpush1.bf16.msra.mxu0 %v2464_v8  ;;  %2467 = vmatprep.subr.bf16.mxu1 %v2466_v9  ;;  %v458_v17 = vld [vmem:[#allocation5 + $0x50] sm:$0xf]  ;;  %v3273_v27 = vsub.s32 3, %v463_v19  ;;  %v2568_v41 = vld [vmem:[#allocation7 + $0x4] ss:$16 sps:$4 sm:$0xff]   ;;  %s2908_s24 = scalar_lea.vmem %s3382_s1, 128 }
  0x95   : > { %2469 = vmatpush1.bf16.msra.mxu1 %v2468_v13  ;;  %2247 = vmatprep.subr.msk.mxu0 %vm486_vm0, %v457_v12  ;;  %v460_v21 = vld [vmem:[%s3426_s2] sm:$0xf]  ;;  %v2569_v42 = vld [vmem:[#allocation7 + $0x8] ss:$16 sps:$4 sm:$0xff]   ;;  %v2571_v43 = vld [vmem:[#allocation7 + $0xc] ss:$16 sps:$4 sm:$0xff]   ;;  %p2909_p10 = scmp.ne.s32.totalorder %s3382_s1, %s2908_s24 }
  0x96   : > { %2250 = vmatprep.subr.msk.mxu1 %vm486_vm0, %v459_v15  ;;  %v465_v24 = vrot.slane %v460_v21, %v3261_v20  ;;  %v469_v25 = vrot.slane %v460_v21, %v3266_v22  ;;  %v473_v26 = vrot.slane %v460_v21, %v3268_v23  ;;  %v477_v34 = vrot.slane %v460_v21, %v3273_v27  ;;  %v2566_v40 = vld [vmem:[#allocation7] ss:$16 sps:$4 sm:$0xff]   ;;  %v2574_v44 = vld [vmem:[#allocation7 + $0x24] ss:$16 sps:$4 sm:$0xff]   ;;  %v2577_v45 = vld [vmem:[#allocation7 + $0x2c] ss:$16 sps:$4 sm:$0xff]  }
  0x97   : > { %v2572_v46 = vld [vmem:[#allocation7 + $0x20] ss:$16 sps:$4 sm:$0xff]   ;;  %v2575_v47 = vld [vmem:[#allocation7 + $0x28] ss:$16 sps:$4 sm:$0xff]   ;;  %v2580_v48 = vld [vmem:[#allocation7 + $0x44] ss:$16 sps:$4 sm:$0xff]   ;;  %p2910_p3 = pnand %p2909_p10, %p3198_p5 }
  0x98   : > { %2248 = vmatpush1.msk.msra.mxu0 %vm486_vm0, %v456_v14  ;;  %v2583_v49 = vld [vmem:[#allocation7 + $0x4c] ss:$16 sps:$4 sm:$0xff]   ;;  %v2578_v50 = vld [vmem:[#allocation7 + $0x40] ss:$16 sps:$4 sm:$0xff]   ;;  %v2581_v51 = vld [vmem:[#allocation7 + $0x48] ss:$16 sps:$4 sm:$0xff]  }
  0x99   : > { %2249 = vmatmul.mubr.msk.f32.vlgmr.msra.gmra.mrb[0].mxu0 %vm482_vm1, %v447_v16  ;;  %2251 = vmatpush1.msk.msra.mxu1 %vm486_vm0, %v458_v17  ;;  %v2586_v52 = vld [vmem:[#allocation7 + $0x64] ss:$16 sps:$4 sm:$0xff]   ;;  %v2589_v53 = vld [vmem:[#allocation7 + $0x6c] ss:$16 sps:$4 sm:$0xff]   ;;  %v2584_v54 = vld [vmem:[#allocation7 + $0x60] ss:$16 sps:$4 sm:$0xff]   ;;  %s3380_s12 = scalar_lea.hbm %s3463_s28, %s2415_s27  ;;  %p2911_p7 = pneg %p2910_p3 }
  0x9a   : > { %2252 = vmatmul.mubr.msk.f32.vlgmr.msra.gmra.mrb[0].mxu1 %vm482_vm1, %v447_v16  ;;  %1522 = vmatprep.subr.bf16.mxu0 %v2568_v41  ;;  %v2587_v55 = vld [vmem:[#allocation7 + $0x68] ss:$16 sps:$4 sm:$0xff]   ;;  %v2592_v56 = vld [vmem:[#allocation7 + $0x84] ss:$16 sps:$4 sm:$0xff]   ;;  %v2595_v57 = vld [vmem:[#allocation7 + $0x8c] ss:$16 sps:$4 sm:$0xff]  }
  0x9b   : > { %1604 = vmatprep.subr.bf16.mxu1 %v2571_v43  ;;  %1523 = vmatpush1.bf16.msra.mxu0 %v2566_v40  ;;  %v2590_v58 = vld [vmem:[#allocation7 + $0x80] ss:$16 sps:$4 sm:$0xff]   ;;  %v2593_v59 = vld [vmem:[#allocation7 + $0x88] ss:$16 sps:$4 sm:$0xff]   ;;  %v2598_v60 = vld [vmem:[#allocation7 + $0xa4] ss:$16 sps:$4 sm:$0xff]  }
  0x9c   : > { %1605 = vmatpush1.bf16.msra.mxu1 %v2569_v42  ;;  %1524 = vmatprep.subr.bf16.mxu0 %v2574_v44  ;;  %v2601_v61 = vld [vmem:[#allocation7 + $0xac] ss:$16 sps:$4 sm:$0xff]   ;;  %v2596_v62 = vld [vmem:[#allocation7 + $0xa0] ss:$16 sps:$4 sm:$0xff]   ;;  %v2599_v63 = vld [vmem:[#allocation7 + $0xa8] ss:$16 sps:$4 sm:$0xff]  }
  0x9d   : > { %1606 = vmatprep.subr.bf16.mxu1 %v2577_v45  ;;  %v2604_v0 = vld [vmem:[#allocation7 + $0xc4] ss:$16 sps:$4 sm:$0xff]   ;;  %v2607_v1 = vld [vmem:[#allocation7 + $0xcc] ss:$16 sps:$4 sm:$0xff]   ;;  %v2602_v2 = vld [vmem:[#allocation7 + $0xc0] ss:$16 sps:$4 sm:$0xff]  }
  0x9e   : > { %v2605_v3 = vld [vmem:[#allocation7 + $0xc8] ss:$16 sps:$4 sm:$0xff]   ;;  %v2610_v4 = vld [vmem:[#allocation7 + $0xe4] ss:$16 sps:$4 sm:$0xff]   ;;  %v2613_v5 = vld [vmem:[#allocation7 + $0xec] ss:$16 sps:$4 sm:$0xff]  }
  0x9f   : > { %1525 = vmatpush1.bf16.msra.mxu0 %v2572_v46  ;;  %v2608_v6 = vld [vmem:[#allocation7 + $0xe0] ss:$16 sps:$4 sm:$0xff]   ;;  %v2611_v7 = vld [vmem:[#allocation7 + $0xe8] ss:$16 sps:$4 sm:$0xff]   ;;  %v2616_v8 = vld [vmem:[#allocation7 + $0x104] ss:$16 sps:$4 sm:$0xff]  }
  0xa0   : > { %1607 = vmatpush1.bf16.msra.mxu1 %v2575_v47  ;;  %1526 = vmatprep.subr.bf16.mxu0 %v2580_v48  ;;  %v2619_v9 = vld [vmem:[#allocation7 + $0x10c] ss:$16 sps:$4 sm:$0xff]   ;;  %v2614_v10 = vld [vmem:[#allocation7 + $0x100] ss:$16 sps:$4 sm:$0xff]   ;;  %v2617_v11 = vld [vmem:[#allocation7 + $0x108] ss:$16 sps:$4 sm:$0xff]  }
  0xa1   : > { %1608 = vmatprep.subr.bf16.mxu1 %v2583_v49  ;;  %v2622_v12 = vld [vmem:[#allocation7 + $0x124] ss:$16 sps:$4 sm:$0xff]   ;;  %v2625_v13 = vld [vmem:[#allocation7 + $0x12c] ss:$16 sps:$4 sm:$0xff]   ;;  %v2620_v14 = vld [vmem:[#allocation7 + $0x120] ss:$16 sps:$4 sm:$0xff]  }
  0xa2   : > { %v2623_v15 = vld [vmem:[#allocation7 + $0x128] ss:$16 sps:$4 sm:$0xff]   ;;  %v2637_v40 = vld [vmem:[#allocation7 + $0x16c] ss:$16 sps:$4 sm:$0xff]   ;;  %v2640_v41 = vld [vmem:[#allocation7 + $0x184] ss:$16 sps:$4 sm:$0xff]  }
  0xa3   : > { %1527 = vmatpush1.bf16.msra.mxu0 %v2578_v50  ;;  %v2643_v42 = vld [vmem:[#allocation7 + $0x18c] ss:$16 sps:$4 sm:$0xff]   ;;  %v2638_v43 = vld [vmem:[#allocation7 + $0x180] ss:$16 sps:$4 sm:$0xff]   ;;  %v2641_v44 = vld [vmem:[#allocation7 + $0x188] ss:$16 sps:$4 sm:$0xff]  }
  0xa4   : > { %1609 = vmatpush1.bf16.msra.mxu1 %v2581_v51  ;;  %1528 = vmatprep.subr.bf16.mxu0 %v2586_v52  ;;  %v2646_v45 = vld [vmem:[#allocation7 + $0x1a4] ss:$16 sps:$4 sm:$0xff]   ;;  %v2649_v46 = vld [vmem:[#allocation7 + $0x1ac] ss:$16 sps:$4 sm:$0xff]   ;;  %v2644_v47 = vld [vmem:[#allocation7 + $0x1a0] ss:$16 sps:$4 sm:$0xff]  }
  0xa5   : > { %1610 = vmatprep.subr.bf16.mxu1 %v2589_v53  ;;  %v2647_v48 = vld [vmem:[#allocation7 + $0x1a8] ss:$16 sps:$4 sm:$0xff]   ;;  %v2652_v49 = vld [vmem:[#allocation7 + $0x1c4] ss:$16 sps:$4 sm:$0xff]   ;;  %v2655_v50 = vld [vmem:[#allocation7 + $0x1cc] ss:$16 sps:$4 sm:$0xff]  }
  0xa6   : > { %v2650_v51 = vld [vmem:[#allocation7 + $0x1c0] ss:$16 sps:$4 sm:$0xff]   ;;  %v2653_v52 = vld [vmem:[#allocation7 + $0x1c8] ss:$16 sps:$4 sm:$0xff]   ;;  %v2658_v53 = vld [vmem:[#allocation7 + $0x1e4] ss:$16 sps:$4 sm:$0xff]  }
  0xa7   : > { %1529 = vmatpush1.bf16.msra.mxu0 %v2584_v54  ;;  %v2661_v54 = vld [vmem:[#allocation7 + $0x1ec] ss:$16 sps:$4 sm:$0xff]   ;;  %s2995_s21 = smov [#allocation10]  }
  0xa8   : > { %1611 = vmatpush1.bf16.msra.mxu1 %v2587_v55  ;;  %1530 = vmatprep.subr.bf16.mxu0 %v2592_v56  ;;  %v2656_v55 = vld [vmem:[#allocation7 + $0x1e0] ss:$16 sps:$4 sm:$0xff]   ;;  %v2659_v56 = vld [vmem:[#allocation7 + $0x1e8] ss:$16 sps:$4 sm:$0xff]   ;;  %s2912_s13 = sshll.u32 %s2995_s21, 4  ;;  %s2913_s13 = int_to_ptr.vmem [resolvable:$false] %s2912_s13 }
  0xa9   : > { %1612 = vmatprep.subr.bf16.mxu1 %v2595_v57  ;;  %v2664_v57 = vld [vmem:[#allocation7 + $0x204] ss:$16 sps:$4 sm:$0xff]   ;;  %s2914_s26 = scalar_lea.vmem %s2913_s13, 256  ;;  %p2915_p12 = scmp.lt.s32.totalorder %s3382_s1, %s2913_s13 }
  0xaa   : > { %p2916_p2 = scmp.lt.s32.totalorder %s2914_s26, %s2908_s24 }
  0xab   : > { %1531 = vmatpush1.bf16.msra.mxu0 %v2590_v58  ;;  %v2667_v58 = vld [vmem:[#allocation7 + $0x20c] ss:$16 sps:$4 sm:$0xff]  }
  0xac   : > { %1613 = vmatpush1.bf16.msra.mxu1 %v2593_v59  ;;  %1532 = vmatprep.subr.bf16.mxu0 %v2598_v60  ;;  %p2917_p1 = por %p2916_p2, %p2915_p12 }
  0xad   : > { %1614 = vmatprep.subr.bf16.mxu1 %v2601_v61 }
  0xae   : > { %p2918_p4 = pnand %p2917_p1, %p2911_p7 }
  0xaf   : > { %1533 = vmatpush1.bf16.msra.mxu0 %v2596_v62  ;;  %v641_v62 = vld [vmem:[%s3427_s3] sm:$0xf] }
  0xb0   : > { %1615 = vmatpush1.bf16.msra.mxu1 %v2599_v63  ;;  %1534 = vmatprep.subr.bf16.mxu0 %v2604_v0  ;;  %v642_v63 = vld [vmem:[%s3428_s4] sm:$0xf]  ;;  %v678_v0 = vrot.slane %v641_v62, %v3266_v22 }
  0xb1   : > { %1616 = vmatprep.subr.bf16.mxu1 %v2607_v1  ;;  %v674_v1 = vrot.slane %v641_v62, %v3261_v20 }
  0xb3   : > { %1535 = vmatpush1.bf16.msra.mxu0 %v2602_v2  ;;  %v686_v2 = vrot.slane %v641_v62, %v3273_v27 }
  0xb4   : > { %1617 = vmatpush1.bf16.msra.mxu1 %v2605_v3  ;;  %1536 = vmatprep.subr.bf16.mxu0 %v2610_v4  ;;  %v682_v3 = vrot.slane %v641_v62, %v3268_v23  ;;  %v2704_v62 = vld [vmem:[#allocation7 + $0x2e0] ss:$16 sps:$4 sm:$0xff]  }
  0xb5   : > { %1618 = vmatprep.subr.bf16.mxu1 %v2613_v5  ;;  %v703_v5 = vrot.slane %v642_v63, %v3266_v22 }
  0xb7   : > { %1537 = vmatpush1.bf16.msra.mxu0 %v2608_v6  ;;  %v699_v6 = vrot.slane %v642_v63, %v3261_v20 }
  0xb8   : > { %1619 = vmatpush1.bf16.msra.mxu1 %v2611_v7  ;;  %1538 = vmatprep.subr.bf16.mxu0 %v2616_v8  ;;  %v711_v7 = vrot.slane %v642_v63, %v3273_v27  ;;  %v707_v8 = vrot.slane %v642_v63, %v3268_v23  ;;  %v2707_v63 = vld [vmem:[#allocation7 + $0x2e8] ss:$16 sps:$4 sm:$0xff]  }
  0xb9   : > { %1620 = vmatprep.subr.bf16.mxu1 %v2619_v9 }
  0xbb   : > { %1539 = vmatpush1.bf16.msra.mxu0 %v2614_v10 }
  0xbc   : > { %1621 = vmatpush1.bf16.msra.mxu1 %v2617_v11  ;;  %1540 = vmatprep.subr.bf16.mxu0 %v2622_v12 }
  0xbd   : > { %1622 = vmatprep.subr.bf16.mxu1 %v2625_v13 }
  0xbf   : > { %1541 = vmatpush1.bf16.msra.mxu0 %v2620_v14 }
  0xc0   : > { %1623 = vmatpush1.bf16.msra.mxu1 %v2623_v15 }
 0x16c   : > { %v565_v28 = vpop.f32.mrb[0].mxu0 }
 0x16d   : > { %v3275_v29 = vadd.f32 %v565_v28, %v465_v24  ;;  %v567_v30 = vpop.f32.mrb[1].mxu0  ;;  %v636_v31 = vpop.f32.mrb[0].mxu1 }
 0x16e   : > { %v3277_v32 = vadd.f32 %v567_v30, %v469_v25  ;;  %v3279_v33 = vadd.f32 %v636_v31, %v473_v26  ;;  %v638_v35 = vpop.f32.mrb[1].mxu1 }
 0x16f   : > { %v3284_v37 = vadd.f32 %v638_v35, %v477_v34  ;;  %v2631_v34 = vld [vmem:[#allocation7 + $0x14c] ss:$16 sps:$4 sm:$0xff]   ;;  %v2626_v35 = vld [vmem:[#allocation7 + $0x140] ss:$16 sps:$4 sm:$0xff]  }
 0x170   : > { %v643_v36 = vadd.f32 %v3277_v32, %v3275_v29  ;;  %1624 = vmatprep.subr.bf16.mxu1 %v2631_v34  ;;  %v2662_v34 = vld [vmem:[#allocation7 + $0x200] ss:$16 sps:$4 sm:$0xff]  }
 0x172   : > { %v644_v38 = vadd.f32 %v643_v36, %v3279_v33  ;;  %v2629_v36 = vld [vmem:[#allocation7 + $0x148] ss:$16 sps:$4 sm:$0xff]  }
 0x173   : > { %1625 = vmatpush1.bf16.msra.mxu1 %v2629_v36  ;;  %v2673_v36 = vld [vmem:[#allocation7 + $0x22c] ss:$16 sps:$4 sm:$0xff]  }
 0x174   : > { %v645_v39 = vadd.f32 %v644_v38, %v3284_v37  ;;  %v2634_v38 = vld [vmem:[#allocation7 + $0x164] ss:$16 sps:$4 sm:$0xff]   ;;  %1626 = vmatprep.subr.bf16.mxu1 %v2637_v40 }
 0x175   : > { %v2676_v40 = vld [vmem:[#allocation7 + $0x244] ss:$16 sps:$4 sm:$0xff]  }
 0x176   : > { %646 = vadd.xlane.f32.xlu0 %v645_v39  ;;  %v2635_v39 = vld [vmem:[#allocation7 + $0x168] ss:$16 sps:$4 sm:$0xff]  }
 0x177   : > { %1627 = vmatpush1.bf16.msra.mxu1 %v2635_v39  ;;  %v2671_v39 = vld [vmem:[#allocation7 + $0x228] ss:$16 sps:$4 sm:$0xff]  }
 0x178   : > { %1628 = vmatprep.subr.bf16.mxu1 %v2643_v42  ;;  %v2674_v42 = vld [vmem:[#allocation7 + $0x240] ss:$16 sps:$4 sm:$0xff]  }
 0x17b   : > { %1629 = vmatpush1.bf16.msra.mxu1 %v2641_v44  ;;  %v2682_v44 = vld [vmem:[#allocation7 + $0x264] ss:$16 sps:$4 sm:$0xff]  }
 0x17c   : > { %1630 = vmatprep.subr.bf16.mxu1 %v2649_v46  ;;  %v2680_v46 = vld [vmem:[#allocation7 + $0x260] ss:$16 sps:$4 sm:$0xff]  }
 0x17f   : > { %1631 = vmatpush1.bf16.msra.mxu1 %v2647_v48  ;;  %v2688_v48 = vld [vmem:[#allocation7 + $0x284] ss:$16 sps:$4 sm:$0xff]  }
 0x180   : > { %1632 = vmatprep.subr.bf16.mxu1 %v2655_v50  ;;  %v2686_v50 = vld [vmem:[#allocation7 + $0x280] ss:$16 sps:$4 sm:$0xff]  }
 0x183   : > { %1633 = vmatpush1.bf16.msra.mxu1 %v2653_v52  ;;  %v2694_v52 = vld [vmem:[#allocation7 + $0x2a4] ss:$16 sps:$4 sm:$0xff]  }
 0x184   : > { %1634 = vmatprep.subr.bf16.mxu1 %v2661_v54  ;;  %v2692_v54 = vld [vmem:[#allocation7 + $0x2a0] ss:$16 sps:$4 sm:$0xff]  }
 0x187   : > { %1635 = vmatpush1.bf16.msra.mxu1 %v2659_v56  ;;  %v2700_v56 = vld [vmem:[#allocation7 + $0x2c4] ss:$16 sps:$4 sm:$0xff]  }
 0x188   : > { %1645 = vmatprep.subr.bf16.mxu1 %v2667_v58  ;;  %v2698_v58 = vld [vmem:[#allocation7 + $0x2c0] ss:$16 sps:$4 sm:$0xff]  }
 0x203   : > { %v647_v16 = vpop.xlane.xlu0 %646 }
 0x204   : > { %v649_v17 = vmul.f32 0.001953125, %v647_v16 }
 0x206   : > { %v3289_v18 = vsub.f32 %v3275_v29, %v649_v17  ;;  %v3292_v19 = vsub.f32 %v3277_v32, %v649_v17  ;;  %v3295_v21 = vsub.f32 %v3279_v33, %v649_v17  ;;  %v3298_v24 = vsub.f32 %v3284_v37, %v649_v17  ;;  %v2628_v33 = vld [vmem:[#allocation7 + $0x144] ss:$16 sps:$4 sm:$0xff]   ;;  %v2632_v37 = vld [vmem:[#allocation7 + $0x160] ss:$16 sps:$4 sm:$0xff]  }
 0x207   : > { %1542 = vmatprep.subr.bf16.mxu0 %v2628_v33 }
 0x208   : > { %v654_v25 = vmul.f32 %v3289_v18, %v3289_v18  ;;  %v655_v26 = vmul.f32 %v3292_v19, %v3292_v19  ;;  %v656_v28 = vmul.f32 %v3295_v21, %v3295_v21  ;;  %v657_v30 = vmul.f32 %v3298_v24, %v3298_v24  ;;  %1543 = vmatpush1.bf16.msra.mxu0 %v2626_v35 }
 0x209   : > { %1544 = vmatprep.subr.bf16.mxu0 %v2634_v38  ;;  %v2668_v38 = vld [vmem:[#allocation7 + $0x220] ss:$16 sps:$4 sm:$0xff]  }
 0x20a   : > { %v658_v29 = vadd.f32 %v655_v26, %v654_v25 }
 0x20c   : > { %v659_v31 = vadd.f32 %v658_v29, %v656_v28  ;;  %1545 = vmatpush1.bf16.msra.mxu0 %v2632_v37 }
 0x20d   : > { %1546 = vmatprep.subr.bf16.mxu0 %v2640_v41  ;;  %v2679_v41 = vld [vmem:[#allocation7 + $0x24c] ss:$16 sps:$4 sm:$0xff]  }
 0x20e   : > { %v660_v32 = vadd.f32 %v659_v31, %v657_v30 }
 0x210   : > { %661 = vadd.xlane.f32.xlu0 %v660_v32  ;;  %1547 = vmatpush1.bf16.msra.mxu0 %v2638_v43  ;;  %v2677_v43 = vld [vmem:[#allocation7 + $0x248] ss:$16 sps:$4 sm:$0xff]  }
 0x211   : > { %1548 = vmatprep.subr.bf16.mxu0 %v2646_v45  ;;  %v2685_v45 = vld [vmem:[#allocation7 + $0x26c] ss:$16 sps:$4 sm:$0xff]  }
 0x214   : > { %1549 = vmatpush1.bf16.msra.mxu0 %v2644_v47  ;;  %v2683_v47 = vld [vmem:[#allocation7 + $0x268] ss:$16 sps:$4 sm:$0xff]  }
 0x215   : > { %1550 = vmatprep.subr.bf16.mxu0 %v2652_v49  ;;  %v2691_v49 = vld [vmem:[#allocation7 + $0x28c] ss:$16 sps:$4 sm:$0xff]  }
 0x218   : > { %1551 = vmatpush1.bf16.msra.mxu0 %v2650_v51  ;;  %v2689_v51 = vld [vmem:[#allocation7 + $0x288] ss:$16 sps:$4 sm:$0xff]  }
 0x219   : > { %1552 = vmatprep.subr.bf16.mxu0 %v2658_v53  ;;  %v2697_v53 = vld [vmem:[#allocation7 + $0x2ac] ss:$16 sps:$4 sm:$0xff]  }
 0x21c   : > { %1553 = vmatpush1.bf16.msra.mxu0 %v2656_v55  ;;  %v2695_v55 = vld [vmem:[#allocation7 + $0x2a8] ss:$16 sps:$4 sm:$0xff]  }
 0x21d   : > { %1563 = vmatprep.subr.bf16.mxu0 %v2664_v57  ;;  %v2703_v57 = vld [vmem:[#allocation7 + $0x2cc] ss:$16 sps:$4 sm:$0xff]  }
 0x29d   : > { %v662_v59 = vpop.xlane.xlu0 %661 }
 0x29e   : > { %v663_v60 = vmul.f32 0.001953125, %v662_v59  ;;  %v2701_v59 = vld [vmem:[#allocation7 + $0x2c8] ss:$16 sps:$4 sm:$0xff]  }
 0x2a0   : > { %v664_v61 = vadd.f32 1e-05, %v663_v60  ;;  %v2706_v60 = vld [vmem:[#allocation7 + $0x2e4] ss:$16 sps:$4 sm:$0xff]  }
 0x2a2   : > { %2790 = vrsqrt.f32 %v664_v61  ;;  %v2709_v61 = vld [vmem:[#allocation7 + $0x2ec] ss:$16 sps:$4 sm:$0xff]  }
 0x2ac   : > { %v2791_v4 = vpop.eup %2790 }
 0x2ad   : > { %v667_v9 = vmul.f32 %v2791_v4, %v3292_v19  ;;  %v666_v10 = vmul.f32 %v2791_v4, %v3289_v18  ;;  %v669_v11 = vmul.f32 %v2791_v4, %v3298_v24  ;;  %v668_v12 = vmul.f32 %v2791_v4, %v3295_v21  ;;  %v2665_v24 = vld [vmem:[#allocation7 + $0x208] ss:$16 sps:$4 sm:$0xff]   ;;  %v2670_v21 = vld [vmem:[#allocation7 + $0x224] ss:$16 sps:$4 sm:$0xff]  }
 0x2ae   : > { %v2718_v4 = vld [vmem:[#allocation7 + $0x324] ss:$16 sps:$4 sm:$0xff]  }
 0x2af   : > { %v692_v13 = vmul.f32 %v678_v0, %v667_v9  ;;  %v691_v14 = vmul.f32 %v674_v1, %v666_v10  ;;  %v694_v15 = vmul.f32 %v686_v2, %v669_v11  ;;  %v693_v16 = vmul.f32 %v682_v3, %v668_v12  ;;  %v2712_v0 = vld [vmem:[#allocation7 + $0x304] ss:$16 sps:$4 sm:$0xff]   ;;  %v2715_v1 = vld [vmem:[#allocation7 + $0x30c] ss:$16 sps:$4 sm:$0xff]   ;;  %v2710_v2 = vld [vmem:[#allocation7 + $0x300] ss:$16 sps:$4 sm:$0xff]  }
 0x2b0   : > { %v2713_v3 = vld [vmem:[#allocation7 + $0x308] ss:$16 sps:$4 sm:$0xff]   ;;  %v2727_v9 = vld [vmem:[#allocation7 + $0x34c] ss:$16 sps:$4 sm:$0xff]   ;;  %v2722_v10 = vld [vmem:[#allocation7 + $0x340] ss:$16 sps:$4 sm:$0xff]  }
 0x2b1   : > { %v717_v17 = vadd.f32 %v703_v5, %v692_v13  ;;  %v716_v25 = vadd.f32 %v699_v6, %v691_v14  ;;  %v719_v26 = vadd.f32 %v711_v7, %v694_v15  ;;  %v3326_v28 = vadd.f32 %v707_v8, %v693_v16  ;;  %v2721_v5 = vld [vmem:[#allocation7 + $0x32c] ss:$16 sps:$4 sm:$0xff]   ;;  %v2716_v6 = vld [vmem:[#allocation7 + $0x320] ss:$16 sps:$4 sm:$0xff]   ;;  %v2719_v7 = vld [vmem:[#allocation7 + $0x328] ss:$16 sps:$4 sm:$0xff]  }
 0x2b2   : > { %v2724_v8 = vld [vmem:[#allocation7 + $0x344] ss:$16 sps:$4 sm:$0xff]   ;;  %v2725_v11 = vld [vmem:[#allocation7 + $0x348] ss:$16 sps:$4 sm:$0xff]   ;;  %v2733_v13 = vld [vmem:[#allocation7 + $0x36c] ss:$16 sps:$4 sm:$0xff]  }
 0x2b3   : > { %v721_v29 = vmul.f32 0.01, %v717_v17  ;;  %v720_v30 = vmul.f32 0.01, %v716_v25  ;;  %v723_v31 = vmul.f32 0.01, %v719_v26 }
 0x2b4   : > { %v2730_v12 = vld [vmem:[#allocation7 + $0x364] ss:$16 sps:$4 sm:$0xff]   ;;  %v2728_v14 = vld [vmem:[#allocation7 + $0x360] ss:$16 sps:$4 sm:$0xff]   ;;  %v2731_v15 = vld [vmem:[#allocation7 + $0x368] ss:$16 sps:$4 sm:$0xff]  }
 0x2b5   : > { %v725_v32 = vmax.f32 %v717_v17, %v721_v29  ;;  %v724_v19 = vmax.f32 %v716_v25, %v720_v30  ;;  %v727_v33 = vmax.f32 %v719_v26, %v723_v31  ;;  %v2736_v16 = vld [vmem:[#allocation7 + $0x384] ss:$16 sps:$4 sm:$0xff]   ;;  %v2739_v17 = vld [vmem:[#allocation7 + $0x38c] ss:$16 sps:$4 sm:$0xff]   ;;  %v2734_v25 = vld [vmem:[#allocation7 + $0x380] ss:$16 sps:$4 sm:$0xff]  }
 0x2b6   : > { %v2737_v26 = vld [vmem:[#allocation7 + $0x388] ss:$16 sps:$4 sm:$0xff]   ;;  %v2742_v29 = vld [vmem:[#allocation7 + $0x3a4] ss:$16 sps:$4 sm:$0xff]   ;;  %v2745_v30 = vld [vmem:[#allocation7 + $0x3ac] ss:$16 sps:$4 sm:$0xff]  }
 0x2b7   : > { %v729_v18 = vpack.c.bf16 %v725_v32, %v725_v32  ;;  %v728_v35 = vpack.c.bf16 %v724_v19, %v724_v19  ;;  %v731_v37 = vpack.c.bf16 %v727_v33, %v727_v33  ;;  %v2740_v31 = vld [vmem:[#allocation7 + $0x3a0] ss:$16 sps:$4 sm:$0xff]   ;;  %v2743_v32 = vld [vmem:[#allocation7 + $0x3a8] ss:$16 sps:$4 sm:$0xff]   ;;  %v2748_v19 = vld [vmem:[#allocation7 + $0x3c4] ss:$16 sps:$4 sm:$0xff]  }
 0x2b8   : > { %v2751_v33 = vld [vmem:[#allocation7 + $0x3cc] ss:$16 sps:$4 sm:$0xff]  }
 0x2b9   : > { %1554 = vmatprep.mubr.bf16.mxu0 %v729_v18  ;;  %1636 = vmatprep.mubr.bf16.mxu1 %v729_v18  ;;  %v2746_v18 = vld [vmem:[#allocation7 + $0x3c0] ss:$16 sps:$4 sm:$0xff]  }
 0x2ba   : > { %1555 = vmatmul.mubr.bf16.vlgmr.msra.gmra.mrb[4].mxu0 %v728_v35  ;;  %1637 = vmatmul.mubr.bf16.vlgmr.msra.gmra.mrb[4].mxu1 %v728_v35  ;;  %v2757_v35 = vld [vmem:[#allocation7 + $0x3ec] ss:$16 sps:$4 sm:$0xff]  }
 0x2bb   : > { %1564 = vmatpush1.bf16.msra.mxu0 %v2662_v34  ;;  %1646 = vmatpush1.bf16.msra.mxu1 %v2665_v24  ;;  %v2749_v34 = vld [vmem:[#allocation7 + $0x3c8] ss:$16 sps:$4 sm:$0xff]   ;;  %v2754_v24 = vld [vmem:[#allocation7 + $0x3e4] ss:$16 sps:$4 sm:$0xff]  }
 0x2bc   : > { %1595 = vmatprep.mubr.bf16.mxu0 %v731_v37  ;;  %1677 = vmatprep.mubr.bf16.mxu1 %v731_v37  ;;  %v2755_v37 = vld [vmem:[#allocation7 + $0x3e8] ss:$16 sps:$4 sm:$0xff]  }
 0x2bd   : > { %1565 = vmatprep.subr.bf16.mxu0 %v2670_v21  ;;  %1647 = vmatprep.subr.bf16.mxu1 %v2673_v36  ;;  %v722_v21 = vmul.f32 0.01, %v3326_v28  ;;  %v2752_v36 = vld [vmem:[#allocation7 + $0x3e0] ss:$16 sps:$4 sm:$0xff]  }
 0x2bf   : > { %1566 = vmatpush1.bf16.msra.mxu0 %v2668_v38  ;;  %1648 = vmatpush1.bf16.msra.mxu1 %v2671_v39  ;;  %v726_v38 = vmax.f32 %v3326_v28, %v722_v21  ;;  %v2780_v21 = vld [vmem:[#allocation8 + $0x28] sm:$0xff]  }
 0x2c0   : > { %1567 = vmatprep.subr.bf16.mxu0 %v2676_v40  ;;  %1649 = vmatprep.subr.bf16.mxu1 %v2679_v41  ;;  %v860_v40 = vld [vmem:[%s3430_s6] sm:$0xf] }
 0x2c1   : > { %v730_v39 = vpack.c.bf16 %v726_v38, %v726_v38  ;;  %v865_v41 = vrot.slane %v860_v40, %v3261_v20  ;;  %v2783_v38 = vld [vmem:[#allocation8 + $0xf0] sm:$0xff]  }
 0x2c3   : > { %1568 = vmatpush1.bf16.msra.mxu0 %v2674_v42  ;;  %1650 = vmatpush1.bf16.msra.mxu1 %v2677_v43  ;;  %v869_v42 = vrot.slane %v860_v40, %v3266_v22 }
 0x2c4   : > { %1569 = vmatprep.subr.bf16.mxu0 %v2682_v44  ;;  %1651 = vmatprep.subr.bf16.mxu1 %v2685_v45  ;;  %v873_v44 = vrot.slane %v860_v40, %v3268_v23 }
 0x2c7   : > { %1570 = vmatpush1.bf16.msra.mxu0 %v2680_v46  ;;  %1652 = vmatpush1.bf16.msra.mxu1 %v2683_v47 }
 0x2c8   : > { %1571 = vmatprep.subr.bf16.mxu0 %v2688_v48  ;;  %1653 = vmatprep.subr.bf16.mxu1 %v2691_v49  ;;  %v877_v49 = vrot.slane %v860_v40, %v3273_v27  ;;  %v2785_v40 = vld [vmem:[#allocation8 + $0xb0] sm:$0xff]  }
 0x2cb   : > { %1572 = vmatpush1.bf16.msra.mxu0 %v2686_v50  ;;  %1654 = vmatpush1.bf16.msra.mxu1 %v2689_v51 }
 0x2cc   : > { %1573 = vmatprep.subr.bf16.mxu0 %v2694_v52  ;;  %1655 = vmatprep.subr.bf16.mxu1 %v2697_v53 }
 0x2cf   : > { %1574 = vmatpush1.bf16.msra.mxu0 %v2692_v54  ;;  %1656 = vmatpush1.bf16.msra.mxu1 %v2695_v55 }
 0x2d0   : > { %1575 = vmatprep.subr.bf16.mxu0 %v2700_v56  ;;  %1657 = vmatprep.subr.bf16.mxu1 %v2703_v57 }
 0x2d3   : > { %1576 = vmatpush1.bf16.msra.mxu0 %v2698_v58  ;;  %1658 = vmatpush1.bf16.msra.mxu1 %v2701_v59  ;;  %v2758_v59 = vld [vmem:[#allocation8 + $0x40] sm:$0xff]  }
 0x2d4   : > { %1577 = vmatprep.subr.bf16.mxu0 %v2706_v60  ;;  %1659 = vmatprep.subr.bf16.mxu1 %v2709_v61  ;;  %v2759_v60 = vld [vmem:[#allocation8 + $0xc0] sm:$0xff]  }
 0x2d5   : > { %v2760_v61 = vld [vmem:[#allocation8] sm:$0xff]  }
 0x2d7   : > { %1578 = vmatpush1.bf16.msra.mxu0 %v2704_v62  ;;  %1660 = vmatpush1.bf16.msra.mxu1 %v2707_v63  ;;  %v2761_v62 = vld [vmem:[#allocation8 + $0x80] sm:$0xff]  }
 0x2d8   : > { %1579 = vmatprep.subr.bf16.mxu0 %v2712_v0  ;;  %1661 = vmatprep.subr.bf16.mxu1 %v2715_v1 }
 0x2db   : > { %1580 = vmatpush1.bf16.msra.mxu0 %v2710_v2  ;;  %1662 = vmatpush1.bf16.msra.mxu1 %v2713_v3 }
 0x2dc   : > { %1581 = vmatprep.subr.bf16.mxu0 %v2718_v4  ;;  %1663 = vmatprep.subr.bf16.mxu1 %v2721_v5 }
 0x2df   : > { %1582 = vmatpush1.bf16.msra.mxu0 %v2716_v6  ;;  %1664 = vmatpush1.bf16.msra.mxu1 %v2719_v7 }
 0x2e0   : > { %1583 = vmatprep.subr.bf16.mxu0 %v2724_v8  ;;  %1665 = vmatprep.subr.bf16.mxu1 %v2727_v9 }
 0x2e3   : > { %1584 = vmatpush1.bf16.msra.mxu0 %v2722_v10  ;;  %1666 = vmatpush1.bf16.msra.mxu1 %v2725_v11 }
 0x2e4   : > { %1585 = vmatprep.subr.bf16.mxu0 %v2730_v12  ;;  %1667 = vmatprep.subr.bf16.mxu1 %v2733_v13  ;;  %v2762_v12 = vld [vmem:[#allocation8 + $0x48] sm:$0xff]  }
 0x2e5   : > { %v2763_v13 = vld [vmem:[#allocation8 + $0xc8] sm:$0xff]  }
 0x2e7   : > { %1586 = vmatpush1.bf16.msra.mxu0 %v2728_v14  ;;  %1668 = vmatpush1.bf16.msra.mxu1 %v2731_v15  ;;  %v2764_v14 = vld [vmem:[#allocation8 + $0x8] sm:$0xff]  }
 0x2e8   : > { %1587 = vmatprep.subr.bf16.mxu0 %v2736_v16  ;;  %1669 = vmatprep.subr.bf16.mxu1 %v2739_v17  ;;  %v2765_v15 = vld [vmem:[#allocation8 + $0x88] sm:$0xff]   ;;  %v2766_v16 = vld [vmem:[#allocation8 + $0x50] sm:$0xff]  }
 0x2e9   : > { %v2767_v17 = vld [vmem:[#allocation8 + $0xd0] sm:$0xff]  }
 0x2eb   : > { %1588 = vmatpush1.bf16.msra.mxu0 %v2734_v25  ;;  %1670 = vmatpush1.bf16.msra.mxu1 %v2737_v26  ;;  %v2768_v25 = vld [vmem:[#allocation8 + $0x10] sm:$0xff]  }
 0x2ec   : > { %1589 = vmatprep.subr.bf16.mxu0 %v2742_v29  ;;  %1671 = vmatprep.subr.bf16.mxu1 %v2745_v30  ;;  %v2769_v26 = vld [vmem:[#allocation8 + $0x90] sm:$0xff]   ;;  %v2770_v29 = vld [vmem:[#allocation8 + $0x58] sm:$0xff]  }
 0x2ed   : > { %v2771_v30 = vld [vmem:[#allocation8 + $0xd8] sm:$0xff]  }
 0x2ef   : > { %1590 = vmatpush1.bf16.msra.mxu0 %v2740_v31  ;;  %1672 = vmatpush1.bf16.msra.mxu1 %v2743_v32  ;;  %v2772_v31 = vld [vmem:[#allocation8 + $0x18] sm:$0xff]  }
 0x2f0   : > { %1591 = vmatprep.subr.bf16.mxu0 %v2748_v19  ;;  %1673 = vmatprep.subr.bf16.mxu1 %v2751_v33  ;;  %v2773_v32 = vld [vmem:[#allocation8 + $0x98] sm:$0xff]   ;;  %v2774_v19 = vld [vmem:[#allocation8 + $0x60] sm:$0xff]  }
 0x2f1   : > { %v2775_v33 = vld [vmem:[#allocation8 + $0xe0] sm:$0xff]  }
 0x2f3   : > { %1592 = vmatpush1.bf16.msra.mxu0 %v2746_v18  ;;  %1674 = vmatpush1.bf16.msra.mxu1 %v2749_v34  ;;  %v2776_v18 = vld [vmem:[#allocation8 + $0x20] sm:$0xff]  }
 0x2f4   : > { %1593 = vmatprep.subr.bf16.mxu0 %v2754_v24  ;;  %1675 = vmatprep.subr.bf16.mxu1 %v2757_v35  ;;  %v2777_v34 = vld [vmem:[#allocation8 + $0xa0] sm:$0xff]   ;;  %v2778_v24 = vld [vmem:[#allocation8 + $0x68] sm:$0xff]  }
 0x2f5   : > { %v2779_v35 = vld [vmem:[#allocation8 + $0xe8] sm:$0xff]  }
 0x2f7   : > { %1594 = vmatpush1.bf16.msra.mxu0 %v2752_v36  ;;  %1676 = vmatpush1.bf16.msra.mxu1 %v2755_v37  ;;  %v2781_v36 = vld [vmem:[#allocation8 + $0xa8] sm:$0xff]   ;;  %v2782_v37 = vld [vmem:[#allocation8 + $0x70] sm:$0xff]  }
 0x2f8   : > { %2418 = vmatprep.subr.bf16.mxu0 %v2758_v59  ;;  %2440 = vmatprep.subr.bf16.mxu1 %v2759_v60 }
 0x2fa   : > { %1596 = vmatmul.mubr.bf16.vlgmr.msra.gmra.mrb[4].mxu0 %v730_v39  ;;  %1678 = vmatmul.mubr.bf16.vlgmr.msra.gmra.mrb[4].mxu1 %v730_v39  ;;  %v2784_v39 = vld [vmem:[#allocation8 + $0x30] sm:$0xff]  }
 0x2fb   : > { %2419 = vmatpush3.bf16.msra.mxu0 %v2760_v61  ;;  %2441 = vmatpush3.bf16.msra.mxu1 %v2761_v62 }
 0x2fc   : > { %2420 = vmatprep.subr.bf16.mxu0 %v2762_v12  ;;  %2442 = vmatprep.subr.bf16.mxu1 %v2763_v13 }
 0x2ff   : > { %2421 = vmatpush3.bf16.msra.mxu0 %v2764_v14  ;;  %2443 = vmatpush3.bf16.msra.mxu1 %v2765_v15 }
 0x300   : > { %2422 = vmatprep.subr.bf16.mxu0 %v2766_v16  ;;  %2444 = vmatprep.subr.bf16.mxu1 %v2767_v17  ;;  %v2381_v16 = vld [vmem:[%s3462_s25] ss:$0 sm:$0xff] }
 0x303   : > { %2423 = vmatpush3.bf16.msra.mxu0 %v2768_v25  ;;  %2445 = vmatpush3.bf16.msra.mxu1 %v2769_v26 }
 0x304   : > { %2424 = vmatprep.subr.bf16.mxu0 %v2770_v29  ;;  %2446 = vmatprep.subr.bf16.mxu1 %v2771_v30 }
 0x307   : > { %2425 = vmatpush3.bf16.msra.mxu0 %v2772_v31  ;;  %2447 = vmatpush3.bf16.msra.mxu1 %v2773_v32 }
 0x308   : > { %2426 = vmatprep.subr.bf16.mxu0 %v2774_v19  ;;  %2448 = vmatprep.subr.bf16.mxu1 %v2775_v33 }
 0x30b   : > { %2427 = vmatpush3.bf16.msra.mxu0 %v2776_v18  ;;  %2449 = vmatpush3.bf16.msra.mxu1 %v2777_v34 }
 0x30c   : > { %2428 = vmatprep.subr.bf16.mxu0 %v2778_v24  ;;  %2450 = vmatprep.subr.bf16.mxu1 %v2779_v35 }
 0x30f   : > { %2429 = vmatpush3.bf16.msra.mxu0 %v2780_v21  ;;  %2451 = vmatpush3.bf16.msra.mxu1 %v2781_v36 }
 0x310   : > { %2430 = vmatprep.subr.bf16.mxu0 %v2782_v37  ;;  %2452 = vmatprep.subr.bf16.mxu1 %v2783_v38 }
 0x313   : > { %2431 = vmatpush3.bf16.msra.mxu0 %v2784_v39  ;;  %2453 = vmatpush3.bf16.msra.mxu1 %v2785_v40 }
 0x3cd   : > { %v1597_v43 = vpop.f32.mrb[4].mxu0  ;;  %v1679_v45 = vpop.f32.mrb[4].mxu1 }
 0x3ce   : > { %v2470_v46 = vadd.f32 %v1597_v43, %v865_v41  ;;  %v1599_v47 = vpop.f32.mrb[5].mxu0  ;;  %v1681_v28 = vpop.f32.mrb[5].mxu1  ;;  %v2472_v54 = vadd.f32 %v1679_v45, %v873_v44  ;;  %v2786_v41 = vld [vmem:[#allocation8 + $0x78] sm:$0xff]  }
 0x3cf   : > { %v2471_v48 = vadd.f32 %v1599_v47, %v869_v42  ;;  %v1601_v50 = vpop.f32.mrb[6].mxu0  ;;  %v1683_v51 = vpop.f32.mrb[6].mxu1  ;;  %v2473_v56 = vadd.f32 %v1681_v28, %v877_v49  ;;  %v2787_v42 = vld [vmem:[#allocation8 + $0xf8] sm:$0xff]   ;;  %2432 = vmatprep.subr.bf16.mxu0 %v2786_v41  ;;  %v1686_v28 = vld [vmem:[%s3431_s7] sm:$0xf] }
 0x3d0   : > { %v1602_v52 = vpop.f32.mrb[7].mxu0  ;;  %v1684_v53 = vpop.f32.mrb[7].mxu1  ;;  %v2788_v43 = vld [vmem:[#allocation8 + $0x38] sm:$0xff]   ;;  %2454 = vmatprep.subr.bf16.mxu1 %v2787_v42  ;;  %v1722_v49 = vrot.slane %v1686_v28, %v3266_v22  ;;  %v1730_v50 = vrot.slane %v1686_v28, %v3273_v27  ;;  %v1718_v51 = vrot.slane %v1686_v28, %v3261_v20 }
 0x3d1   : > { %v1688_v55 = vadd.f32 %v2471_v48, %v2470_v46  ;;  %v2789_v44 = vld [vmem:[#allocation8 + $0xb8] sm:$0xff]   ;;  %2433 = vmatpush3.bf16.msra.mxu0 %v2788_v43  ;;  %v1726_v52 = vrot.slane %v1686_v28, %v3268_v23 }
 0x3d2   : > { %2455 = vmatpush3.bf16.msra.mxu1 %v2789_v44 }
 0x3d3   : > { %v1689_v57 = vadd.f32 %v2472_v54, %v1688_v55 }
 0x3d5   : > { %v1690_v58 = vadd.f32 %v2473_v56, %v1689_v57 }
 0x3d7   : > { %1691 = vadd.xlane.f32.xlu1 %v1690_v58 }
 0x464   : > { %v1692_v63 = vpop.xlane.xlu1 %1691 }
 0x465   : > { %v1693_v0 = vmul.f32 0.001953125, %v1692_v63 }
 0x467   : > { %v3337_v1 = vsub.f32 %v2470_v46, %v1693_v0  ;;  %v3339_v2 = vsub.f32 %v2471_v48, %v1693_v0  ;;  %v3341_v3 = vsub.f32 %v2472_v54, %v1693_v0  ;;  %v3343_v4 = vsub.f32 %v2473_v56, %v1693_v0  ;;  %v1687_v48 = vld [vmem:[%s3432_s8] sm:$0xf] }
 0x468   : > { %v1747_v54 = vrot.slane %v1687_v48, %v3266_v22  ;;  %v1755_v55 = vrot.slane %v1687_v48, %v3273_v27  ;;  %v1743_v56 = vrot.slane %v1687_v48, %v3261_v20  ;;  %v1751_v57 = vrot.slane %v1687_v48, %v3268_v23 }
 0x469   : > { %v1698_v5 = vmul.f32 %v3337_v1, %v3337_v1  ;;  %v1699_v6 = vmul.f32 %v3339_v2, %v3339_v2  ;;  %v1700_v7 = vmul.f32 %v3341_v3, %v3341_v3  ;;  %v1701_v9 = vmul.f32 %v3343_v4, %v3343_v4 }
 0x46b   : > { %v1702_v8 = vadd.f32 %v1699_v6, %v1698_v5 }
 0x46d   : > { %v1703_v10 = vadd.f32 %v1702_v8, %v1700_v7 }
 0x46f   : > { %v1704_v11 = vadd.f32 %v1703_v10, %v1701_v9 }
 0x471   : > { %1705 = vadd.xlane.f32.xlu1 %v1704_v11 }
 0x4fe   : > { %v1706_v45 = vpop.xlane.xlu1 %1705 }
 0x4ff   : > { %v1707_v46 = vmul.f32 0.001953125, %v1706_v45 }
 0x501   : > { %v1708_v47 = vadd.f32 1e-05, %v1707_v46 }
 0x503   : > { %2792 = vrsqrt.f32 %v1708_v47 }
 0x50d   : > { %v2793_v53 = vpop.eup %2792 }
 0x50e   : > { %v1711_v58 = vmul.f32 %v2793_v53, %v3339_v2  ;;  %v1713_v59 = vmul.f32 %v2793_v53, %v3343_v4  ;;  %v1710_v60 = vmul.f32 %v2793_v53, %v3337_v1  ;;  %v1712_v61 = vmul.f32 %v2793_v53, %v3341_v3 }
 0x510   : > { %v1736_v62 = vmul.f32 %v1722_v49, %v1711_v58  ;;  %v1738_v63 = vmul.f32 %v1730_v50, %v1713_v59  ;;  %v1735_v0 = vmul.f32 %v1718_v51, %v1710_v60  ;;  %v1737_v5 = vmul.f32 %v1726_v52, %v1712_v61 }
 0x512   : > { %v1761_v6 = vadd.f32 %v1747_v54, %v1736_v62  ;;  %v1763_v22 = vadd.f32 %v1755_v55, %v1738_v63  ;;  %v1760_v7 = vadd.f32 %v1743_v56, %v1735_v0  ;;  %v1762_v27 = vadd.f32 %v1751_v57, %v1737_v5 }
 0x514   : > { %v1765_v8 = vmul.f32 0.01, %v1761_v6  ;;  %v1767_v20 = vmul.f32 0.01, %v1763_v22  ;;  %v1764_v9 = vmul.f32 0.01, %v1760_v7 }
 0x515   : > { %v1766_v23 = vmul.f32 0.01, %v1762_v27 }
 0x516   : > { %v1769_v10 = vmax.f32 %v1761_v6, %v1765_v8  ;;  %v1771_v2 = vmax.f32 %v1763_v22, %v1767_v20  ;;  %v1768_v11 = vmax.f32 %v1760_v7, %v1764_v9 }
 0x517   : > { %v1770_v4 = vmax.f32 %v1762_v27, %v1766_v23 }
 0x518   : > { %v1773_v12 = vpack.c.bf16 %v1769_v10, %v1769_v10  ;;  %v1775_v1 = vpack.c.bf16 %v1771_v2, %v1771_v2  ;;  %v1772_v13 = vpack.c.bf16 %v1768_v11, %v1768_v11 }
 0x519   : > { %v1774_v3 = vpack.c.bf16 %v1770_v4, %v1770_v4 }
 0x51a   : > { %2071 = vmatprep.mubr.bf16.mxu0 %v1773_v12  ;;  %2111 = vmatprep.mubr.bf16.mxu1 %v1775_v1 }
 0x51b   : > { %2072 = vmatmul.mubr.bf16.vlgmr.msra.gmra.mrb[8].mxu0 %v1772_v13  ;;  %2112 = vmatmul.mubr.bf16.vlgmr.msra.gmra.mrb[8].mxu1 %v1774_v3 }
 0x5ee   : > { %v2434_v14 = vpop.f32.mrb[8].mxu0  ;;  %v2456_v15 = vpop.f32.mrb[8].mxu1 }
 0x5ef   : > { %v2435_v17 = vpop.f32.mrb[9].mxu0  ;;  %v2457_v25 = vpop.f32.mrb[9].mxu1 }
 0x5f0   : > { %v2436_v26 = vadd.f32 %v2435_v17, %v2434_v14  ;;  %v2458_v29 = vadd.f32 %v2457_v25, %v2456_v15  ;;  %v2437_v30 = vpop.f32.mrb[10].mxu0  ;;  %v2459_v31 = vpop.f32.mrb[10].mxu1 }
 0x5f1   : > { %v2438_v32 = vpop.f32.mrb[11].mxu0  ;;  %v2460_v19 = vpop.f32.mrb[11].mxu1 }
 0x5f2   : > { %v2074_v33 = vadd.f32 %v2436_v26, %v2381_v16 }
 0x5f4   : > { %v2114_v18 = vadd.f32 %v2458_v29, %v2074_v33 }
 0x5f6   : > { %2119 = vst [vmem:[%s445_s11] sm:$0xff] %v2114_v18 }
 0x5f7   : > { %2921 = shalt.err (!%p2918_p4)
}
 0x5f8   : > { %s2922_s10 = scalar_lea.hbm %s3380_s12, 128  ;;  %s2926_s25 = scalar_lea.hbm %s3463_s28, 256 }
 0x5f9   : > { %p2923_p0 = scmp.ne.s32.totalorder %s3380_s12, %s2922_s10  ;;  %p2927_p8 = scmp.lt.u32.totalorder %s3380_s12, %s3463_s28 }
 0x5fa   : > { %p2928_p13 = scmp.lt.u32.totalorder %s2926_s25, %s2922_s10  ;;  %p2930_p10 = scmp.lt.u32.totalorder %s2922_s10, %s3380_s12 }
 0x5fb   : > { %p2924_p9 = pnand %p2923_p0, %p3198_p5 }
 0x5fc   : > { %p2929_p6 = por %p2928_p13, %p2927_p8 }
 0x5fd   : > { %p2925_p11 = pneg %p2924_p9 }
 0x5fe   : > { %p2931_p3 = por %p2930_p10, %p2929_p6 }
 0x600   : > { %p2932_p7 = pnand %p2931_p3, %p2925_p11 }
 0x602   : > { %2935 = shalt.err (!%p2932_p7)
}
 0x603   : > { %2496 = dma.vmem_to_hbm [thread:$0]  (%p3198_p5), %s3382_s1, 128, %s3380_s12, %s2121_s30  }
 0x604 PF: > { %s3464_s22 = sld [smem:[#allocation15_spill]]  ;;  %s3465_s29 = sld [smem:[#allocation16_spill]] }
 0x605   : > { %p3467_p2 = scmp.ge.s32.totalorder %s2982_s20, 2 }
 0x60a   : > { %s2146_s24 = sand.u32 1, %s3464_s22   ;;  %p3466_p12 = scmp.ne.s32.totalorder %s3465_s29, 0 }
 0x60b   : > { %s2147_s21 = scalar_lea.sflag [#allocation4], %s2146_s24 }
 0x60c   : > { %p2513_p1 = pnand %p3467_p2, %p3466_p12 }
 0x60e   : > { %2965 = dma.done.wait (!%p2513_p1), %s2147_s21, 128  }
 0x60f   : > { %2967 = vsyncadd (!%p2513_p1), %s2147_s21, 4294967168  ;;  %s3468_s13 = smov %s3184_s17  ;;  %p26_p4 = scmp.ge.s32.totalorder %s3184_s17, 4  }
 0x610   : > { %s3469_s17 = smov %s2974_s18  ;;  %s3470_s18 = smov %s2978_s19 }
 0x611   : > { %s3471_s19 = smov %s3194_s15  ;;  %s3472_s20 = smov %s3468_s13 }
 0x612   :  { %28 = sbr.rel (!%p26_p4) target bundleno = 11 (0xb), region = 121 }
 0x619   :  { %2152 = vsyncpa [#allocation3], 1 }
 0x61a   :  { %2154 = vsyncpa [#allocation3 + $0x1], 1 }
 0x61b   :  { %2155 = vsyncpa [#allocation6], 1 }
 0x61c   :  { %2156 = vsyncpa [#allocation9], 1 }
 0x61d   :  { %2157 = vsyncpa [#allocation4], 1 }
 0x61e   :  { %2159 = vsyncpa [#allocation4 + $0x1], 1 }

</bundles_post_ra>
